<compile_context>
chip_gen: v6e
topology: v6e:2x2x1
jax: 0.10.0
libtpu: 0.0.40
codegen_flags: <defaults>
</compile_context>

<pallas_src>
import jax
import jax.numpy as jnp
from jax import lax
from jax.experimental import pallas as pl
from jax.experimental.pallas import tpu as pltpu

LN_EPS = 1e-5  # torch.nn.LayerNorm default


# ----------------------------------------------------------------------------- tiling helpers
def _divisors(x):
    ds = set()
    i = 1
    while i * i <= x:
        if x % i == 0:
            ds.add(i)
            ds.add(x // i)
        i += 1
    return ds


def _row_tile(nn, target=1024):
    """Largest divisor of nn that is a multiple of 128 and <= target; else full nn."""
    cands = [d for d in _divisors(nn) if d % 128 == 0 and d <= target]
    return max(cands) if cands else nn


def _vmem_budget():
    """Generation-aware VMEM budget (~80% of per-core capacity)."""
    cap = 64 << 20  # conservative fallback = v7x per-core VMEM
    try:
        cap = int(pltpu.get_tpu_info().vmem_capacity_bytes)
    except Exception:
        pass
    return int(min(max(cap * 0.8, 32 << 20), 112 << 20))


def _plan_pass2(n, h, isz, budget):
    """Pick (mode, c_blk, ti, tk) for the triangle contraction from the VMEM budget.

    Block-shape constraints: the trailing block dim of every operand must be a
    multiple of 128 or the full dim, hence ti / tk candidates below.
    """
    ti_cands = sorted({d for d in _divisors(n) if d % 128 == 0 or d == n}, reverse=True)
    c_cands = sorted({d for d in _divisors(h) if d <= 128}, reverse=True)

    def fullk_bytes(c, ti):
        # double-buffered leftT (c,n,n) + rightT (c,ti,n) + out (c,ti,n), all in the
        # activation dtype, plus the in-kernel f32 einsum result temp.
        return 2 * c * (n * n + 2 * ti * n) * isz + 4 * c * ti * n

    def ktiled_bytes(c, ti, tk):
        # leftT (c,tk,n) + rightT (c,ti,tk) in activation dtype, f32 out (c,ti,n),
        # all double-buffered, plus the f32 einsum temp.
        return 2 * c * (tk * n * isz + ti * tk * isz + 4 * ti * n) + 4 * c * ti * n

    for ti in ti_cands:                      # prefer the biggest MXU tiles that fit
        for c in c_cands:
            if fullk_bytes(c, ti) <= budget:
                return "fullk", c, ti, n
    for ti in ti_cands:                      # fallback: tile the reduction too
        for tk in ti_cands:
            for c in c_cands:
                if ktiled_bytes(c, ti, tk) <= budget:
                    return "ktiled", c, ti, tk
    # Nothing fits comfortably; take the smallest config and let the compiler try.
    return "ktiled", c_cands[-1], ti_cands[-1], ti_cands[-1]


# ----------------------------------------------------------------------------- kernels
def _proj_kernel(x_ref, m_ref, w_ref, lT_ref, rT_ref):
    """Fused GLU projection + pairwise mask, stored channel-major ([h, rows])."""
    h = lT_ref.shape[1]
    x = x_ref[0]                                                         # [tm, d]
    lr = jnp.dot(x, w_ref[...], preferred_element_type=jnp.float32)     # [tm, 4h] f32
    # GLU(dim=-1): value = lr[:, :2h], gate = lr[:, 2h:]; then chunk into left/right.
    left = lr[:, :h] * jax.nn.sigmoid(lr[:, 2 * h:3 * h])               # [tm, h]
    right = lr[:, h:2 * h] * jax.nn.sigmoid(lr[:, 3 * h:])              # [tm, h]
    m = m_ref[0]                                                         # [1, tm]
    # In-kernel 2-D transpose (XLU, hides under MXU/DMA) -> channel-major store.
    lT_ref[0] = (left.T * m).astype(lT_ref.dtype)                       # [h, tm]
    rT_ref[0] = (right.T * m).astype(rT_ref.dtype)                      # [h, tm]


def _tri_fullk_kernel(rT_ref, lT_ref, o_ref):
    """Full-K channel-batched triangle contraction: no scratch, single MXU einsum."""
    # rT: [c_blk, ti, n(k)], lT: [c_blk, n(k), n(j)]  ->  [c_blk, ti, n(j)]
    o_ref[0] = jnp.einsum(
        'cik,ckj->cij', rT_ref[0], lT_ref[0],
        preferred_element_type=jnp.float32).astype(o_ref.dtype)


def _tri_ktiled_kernel(rT_ref, lT_ref, o_ref):
    """k-tiled fallback: accumulate straight into the resident f32 output block."""
    @pl.when(pl.program_id(3) == 0)
    def _():
        o_ref[...] = jnp.zeros_like(o_ref)

    o_ref[0] += jnp.einsum('cik,ckj->cij', rT_ref[0], lT_ref[0],
                           preferred_element_type=jnp.float32)


def _out_kernel(tri_ref, x_ref, w_out_ref, w_gate_ref, gamma_ref, beta_ref, o_ref):
    """Pair-major LayerNorm (f32 stats) + output projection + recomputed out-gate."""
    tri = tri_ref[0].astype(jnp.float32)                                 # [tm, h]
    mean = jnp.mean(tri, axis=-1, keepdims=True)
    var = jnp.mean(jnp.square(tri - mean), axis=-1, keepdims=True)
    tri = (tri - mean) * lax.rsqrt(var + LN_EPS)
    tri = tri * gamma_ref[...] + beta_ref[...]                           # [1, h] broadcast
    out = jnp.dot(tri.astype(w_out_ref.dtype), w_out_ref[...],
                  preferred_element_type=jnp.float32)                    # [tm, d]
    gate = jax.nn.sigmoid(jnp.dot(x_ref[0], w_gate_ref[...],
                                  preferred_element_type=jnp.float32))   # [tm, h] (h == d)
    o_ref[0] = (out * gate).astype(o_ref.dtype)


# ----------------------------------------------------------------------------- wrapper
def triangle_multiplication(x, mask, params):
    b, n, n2, d = x.shape
    assert n == n2
    w_lr = params["w_lr"]        # [d, 4h]  (GLU: value = [:, :2h], gate = [:, 2h:])
    w_gate = params["w_gate"]    # [d, h]
    w_out = params["w_out"]      # [h, d]
    gamma = params["ln_gamma"]   # [1, h]
    beta = params["ln_beta"]     # [1, h]
    h = w_gate.shape[1]
    assert w_lr.shape == (d, 4 * h) and w_out.shape == (h, d)
    # The module multiplies the out-gate AFTER to_out -> requires dim_hidden == dim.
    assert h == d, "TriangleMultiplication forward requires dim_hidden == dim"

    dtype = x.dtype
    isz = jnp.dtype(dtype).itemsize
    nn = n * n
    budget = _vmem_budget()
    plan_budget = int(budget * 0.9)   # leave headroom for compiler-internal scratch

    # ---- tiles derived from the budget --------------------------------------
    tm = _row_tile(nn, target=1024)

    def _pass1_bytes(t):
        return (2 * isz * (t * d + 2 * h * t + t)
                + 2 * w_lr.dtype.itemsize * d * 4 * h
                + 4 * t * 4 * h * 3)           # in-kernel f32 temporaries

    while tm % 256 == 0 and _pass1_bytes(tm) > plan_budget:
        tm //= 2

    mode, c_blk, ti, tk = _plan_pass2(n, h, isz, plan_budget)

    # ---- glue (free reshapes only) -------------------------------------------
    x3 = x.reshape(b, nn, d)
    mask3 = (mask[:, :, None] & mask[:, None, :]).astype(dtype).reshape(b, 1, nn)

    # -------- pass 1: fused GLU projection, channel-major outputs -------------
    leftT3, rightT3 = pl.pallas_call(
        _proj_kernel,
        out_shape=(jax.ShapeDtypeStruct((b, h, nn), dtype),    # left : [b, c, (k,j)]
                   jax.ShapeDtypeStruct((b, h, nn), dtype)),   # right: [b, c, (k,i)]
        grid_spec=pltpu.PrefetchScalarGridSpec(
            num_scalar_prefetch=0,
            grid=(b, nn // tm),
            in_specs=[
                pl.BlockSpec((1, tm, d), lambda bi, ri: (bi, ri, 0)),     # x rows
                pl.BlockSpec((1, 1, tm), lambda bi, ri: (bi, 0, ri)),     # pairwise mask
                pl.BlockSpec((d, 4 * h), lambda bi, ri: (0, 0)),          # fused GLU weight
            ],
            out_specs=(pl.BlockSpec((1, h, tm), lambda bi, ri: (bi, 0, ri)),
                       pl.BlockSpec((1, h, tm), lambda bi, ri: (bi, 0, ri))),
        ),
        compiler_params=pltpu.CompilerParams(
            dimension_semantics=("parallel", "parallel"),
            vmem_limit_bytes=budget),
    )(x3, mask3, w_lr)

    # glue: free reshape + one minor-dims transpose of right (k,i) -> (i,k).
    # TODO(synk): fold this last transpose into pass 2 via a transposed-lhs dot_general.
    leftT = leftT3.reshape(b, h, n, n)                          # [b, c, k, j]
    rightT = jnp.swapaxes(rightT3.reshape(b, h, n, n), 2, 3)    # [b, c, i, k]

    # -------- pass 2: triangle contraction (incoming) --------------------------
    if mode == "fullk":
        tri_dtype = dtype
        grid2 = (b, h // c_blk, n // ti)
        in_specs2 = [
            pl.BlockSpec((1, c_blk, ti, n), lambda bi, ci, ii: (bi, ci, ii, 0)),
            pl.BlockSpec((1, c_blk, n, n), lambda bi, ci, ii: (bi, ci, 0, 0)),
        ]
        out_spec2 = pl.BlockSpec((1, c_blk, ti, n), lambda bi, ci, ii: (bi, ci, ii, 0))
        kern2 = _tri_fullk_kernel
        sem2 = ("parallel", "parallel", "parallel")
    else:
        tri_dtype = jnp.float32
        grid2 = (b, h // c_blk, n // ti, n // tk)
        in_specs2 = [
            pl.BlockSpec((1, c_blk, ti, tk), lambda bi, ci, ii, ki: (bi, ci, ii, ki)),
            pl.BlockSpec((1, c_blk, tk, n), lambda bi, ci, ii, ki: (bi, ci, ki, 0)),
        ]
        out_spec2 = pl.BlockSpec((1, c_blk, ti, n), lambda bi, ci, ii, ki: (bi, ci, ii, 0))
        kern2 = _tri_ktiled_kernel
        sem2 = ("parallel", "parallel", "parallel", "arbitrary")

    triT = pl.pallas_call(
        kern2,
        out_shape=jax.ShapeDtypeStruct((b, h, n, n), tri_dtype),
        grid_spec=pltpu.PrefetchScalarGridSpec(
            num_scalar_prefetch=0,
            grid=grid2,
            in_specs=in_specs2,
            out_specs=out_spec2,
        ),
        compiler_params=pltpu.CompilerParams(
            dimension_semantics=sem2,
            vmem_limit_bytes=budget),
    )(rightT, leftT)

    # glue: back to pair-major rows for LayerNorm + out projection + gating.
    # TODO(synk): this channel->pair transpose is the one remaining XLA layout pass;
    # it could be folded into pass 3 by consuming the channel-major tri directly.
    tri3 = jnp.transpose(triT, (0, 2, 3, 1)).reshape(b, nn, h)

    # -------- pass 3: LayerNorm + to_out + recomputed out-gate -----------------
    out3 = pl.pallas_call(
        _out_kernel,
        out_shape=jax.ShapeDtypeStruct((b, nn, d), dtype),
        grid_spec=pltpu.PrefetchScalarGridSpec(
            num_scalar_prefetch=0,
            grid=(b, nn // tm),
            in_specs=[
                pl.BlockSpec((1, tm, h), lambda bi, ri: (bi, ri, 0)),     # tri rows
                pl.BlockSpec((1, tm, d), lambda bi, ri: (bi, ri, 0)),     # x rows (for gate)
                pl.BlockSpec((h, d), lambda bi, ri: (0, 0)),              # to_out weight
                pl.BlockSpec((d, h), lambda bi, ri: (0, 0)),              # out-gate weight
                pl.BlockSpec((1, h), lambda bi, ri: (0, 0)),              # LN gamma
                pl.BlockSpec((1, h), lambda bi, ri: (0, 0)),              # LN beta
            ],
            out_specs=pl.BlockSpec((1, tm, d), lambda bi, ri: (bi, ri, 0)),
        ),
        compiler_params=pltpu.CompilerParams(
            dimension_semantics=("parallel", "parallel"),
            vmem_limit_bytes=budget),
    )(tri3, x3, w_out, w_gate, gamma, beta)

    return out3.reshape(b, n, n, d)


# ----------------------------------------------------------------------------- params / reference
def init_params(key, dim, dim_hidden):
    k1, k2, k3, k4, k5 = jax.random.split(key, 5)
    s_in = 1.0 / jnp.sqrt(dim)
    s_h = 1.0 / jnp.sqrt(dim_hidden)
    return {
        "w_lr": jax.random.normal(k1, (dim, 4 * dim_hidden), jnp.float32) * s_in,
        "w_gate": jax.random.normal(k2, (dim, dim_hidden), jnp.float32) * s_in,
        "w_out": jax.random.normal(k3, (dim_hidden, dim), jnp.float32) * s_h,
        "ln_gamma": 1.0 + 0.1 * jax.random.normal(k4, (1, dim_hidden), jnp.float32),
        "ln_beta": 0.1 * jax.random.normal(k5, (1, dim_hidden), jnp.float32),
    }


def reference(x, mask, params):
    """Pure-JAX reference mirroring the PyTorch forward (mix='incoming', eval mode)."""
    w_lr, w_gate, w_out = params["w_lr"], params["w_gate"], params["w_out"]
    gamma, beta = params["ln_gamma"], params["ln_beta"]
    h = w_gate.shape[1]

    mp = (mask[:, :, None] & mask[:, None, :]).astype(x.dtype)[..., None]  # [b,n,n,1]
    lr = x @ w_lr
    lr = lr[..., : 2 * h] * jax.nn.sigmoid(lr[..., 2 * h:])
    left, right = lr[..., :h], lr[..., h:]
    left = left * mp
    right = right * mp
    out = jnp.einsum('bkjc,bkic->bijc', left, right)     # incoming
    mean = out.mean(-1, keepdims=True)
    var = ((out - mean) ** 2).mean(-1, keepdims=True)
    out = (out - mean) / jnp.sqrt(var + LN_EPS) * gamma + beta
    gate = jax.nn.sigmoid(x @ w_gate)
    return (out @ w_out) * gate


if __name__ == "__main__":
    key = jax.random.PRNGKey(0)
    b, n, d = 2, 8, 32
    h = d  # dim_hidden defaults to dim (required by the post-to_out gating)

    kx, km, kp = jax.random.split(key, 3)
    x = jax.random.normal(kx, (b, n, n, d), jnp.float32)
    mask = jax.random.uniform(km, (b, n)) > 0.2
    params = init_params(kp, d, h)

    fn = jax.jit(triangle_multiplication)
    out = jax.block_until_ready(fn(x, mask, params))

    ref = reference(x, mask, params)
    assert out.shape == (b, n, n, d)
    err = float(jnp.max(jnp.abs(out - ref)))
    assert jnp.allclose(out, ref, atol=1e-4, rtol=1e-4), f"max abs err = {err}"
    print("KERNEL_OK")
</pallas_src>

<mosaic_0001>
module attributes {stable_mosaic.version = 11 : i64} {
  func.func @_proj_kernel(%arg0: i32, %arg1: i32, %arg2: memref<1x64x32xf32, #tpu.memory_space<vmem>>, %arg3: memref<1x1x64xf32, #tpu.memory_space<vmem>>, %arg4: memref<32x128xf32, #tpu.memory_space<vmem>>, %arg5: memref<1x32x64xf32, #tpu.memory_space<vmem>>, %arg6: memref<1x32x64xf32, #tpu.memory_space<vmem>>) attributes {dimension_semantics = [#tpu.dimension_semantics<parallel>, #tpu.dimension_semantics<parallel>], iteration_bounds = array<i64: 2, 1>, scalar_prefetch = 0 : i64, scratch_operands = 0 : i64, tpu.core_type = #tpu.core_type<tc>, window_params = [{transform_indices = @transform_0, window_bounds = array<i64: 1, 64, 32>}, {transform_indices = @transform_1, window_bounds = array<i64: 1, 1, 64>}, {pipeline_mode = #tpu.pipeline_mode<synchronous>, transform_indices = @transform_2, window_bounds = array<i64: 32, 128>}, {transform_indices = @transform_3, window_bounds = array<i64: 1, 32, 64>}, {transform_indices = @transform_4, window_bounds = array<i64: 1, 32, 64>}]} {
    %c0 = arith.constant 0 : index
    %c0_0 = arith.constant 0 : index
    %c0_1 = arith.constant 0 : index
    %0 = vector.load %arg2[%c0, %c0_0, %c0_1] : memref<1x64x32xf32, #tpu.memory_space<vmem>>, vector<1x64x32xf32>
    %1 = vector.shape_cast %0 : vector<1x64x32xf32> to vector<64x32xf32>
    %c0_2 = arith.constant 0 : index
    %c0_3 = arith.constant 0 : index
    %2 = vector.load %arg4[%c0_2, %c0_3] : memref<32x128xf32, #tpu.memory_space<vmem>>, vector<32x128xf32>
    %cst = arith.constant dense<0.000000e+00> : vector<64x128xf32>
    %3 = tpu.matmul %1, %2, %cst {dimension_numbers = #tpu.dot_dimension_numbers<[1], [0], [0], [1], [0, 0, 1, 1], [], []>} : vector<64x32xf32>, vector<32x128xf32>, vector<64x128xf32> -> vector<64x128xf32>
    %4 = vector.extract_strided_slice %3 {offsets = [0, 0], sizes = [64, 32], strides = [1, 1]} : vector<64x128xf32> to vector<64x32xf32>
    %5 = vector.extract_strided_slice %3 {offsets = [0, 64], sizes = [64, 32], strides = [1, 1]} : vector<64x128xf32> to vector<64x32xf32>
    %6 = arith.negf %5 : vector<64x32xf32>
    %7 = math.exp %6 : vector<64x32xf32>
    %cst_4 = arith.constant 1.000000e+00 : f32
    %8 = vector.broadcast %cst_4 : f32 to vector<64x32xf32>
    %9 = arith.addf %8, %7 : vector<64x32xf32>
    %10 = arith.divf %8, %9 : vector<64x32xf32>
    %11 = arith.mulf %4, %10 : vector<64x32xf32>
    %12 = vector.extract_strided_slice %3 {offsets = [0, 32], sizes = [64, 32], strides = [1, 1]} : vector<64x128xf32> to vector<64x32xf32>
    %13 = vector.extract_strided_slice %3 {offsets = [0, 96], sizes = [64, 32], strides = [1, 1]} : vector<64x128xf32> to vector<64x32xf32>
    %14 = arith.negf %13 : vector<64x32xf32>
    %15 = math.exp %14 : vector<64x32xf32>
    %cst_5 = arith.constant 1.000000e+00 : f32
    %16 = vector.broadcast %cst_5 : f32 to vector<64x32xf32>
    %17 = arith.addf %16, %15 : vector<64x32xf32>
    %18 = arith.divf %16, %17 : vector<64x32xf32>
    %19 = arith.mulf %12, %18 : vector<64x32xf32>
    %c0_6 = arith.constant 0 : index
    %c0_7 = arith.constant 0 : index
    %c0_8 = arith.constant 0 : index
    %20 = vector.load %arg3[%c0_6, %c0_7, %c0_8] : memref<1x1x64xf32, #tpu.memory_space<vmem>>, vector<1x1x64xf32>
    %21 = vector.shape_cast %20 : vector<1x1x64xf32> to vector<1x64xf32>
    %22 = tpu.transpose %11, [1, 0] : vector<64x32xf32> -> vector<32x64xf32>
    %23 = vector.broadcast %21 : vector<1x64xf32> to vector<32x64xf32>
    %24 = arith.mulf %22, %23 : vector<32x64xf32>
    %c0_9 = arith.constant 0 : index
    %c0_10 = arith.constant 0 : index
    %c0_11 = arith.constant 0 : index
    %25 = vector.load %arg5[%c0_9, %c0_10, %c0_11] : memref<1x32x64xf32, #tpu.memory_space<vmem>>, vector<1x32x64xf32>
    %26 = vector.shape_cast %25 : vector<1x32x64xf32> to vector<32x64xf32>
    %27 = vector.shape_cast %24 : vector<32x64xf32> to vector<1x32x64xf32>
    tpu.vector_store %arg5[%c0_9, %c0_10, %c0_11], %27 {strides = array<i32>} : memref<1x32x64xf32, #tpu.memory_space<vmem>>, vector<1x32x64xf32>,
    %28 = tpu.transpose %19, [1, 0] : vector<64x32xf32> -> vector<32x64xf32>
    %29 = vector.broadcast %21 : vector<1x64xf32> to vector<32x64xf32>
    %30 = arith.mulf %28, %29 : vector<32x64xf32>
    %c0_12 = arith.constant 0 : index
    %c0_13 = arith.constant 0 : index
    %c0_14 = arith.constant 0 : index
    %31 = vector.load %arg6[%c0_12, %c0_13, %c0_14] : memref<1x32x64xf32, #tpu.memory_space<vmem>>, vector<1x32x64xf32>
    %32 = vector.shape_cast %31 : vector<1x32x64xf32> to vector<32x64xf32>
    %33 = vector.shape_cast %30 : vector<32x64xf32> to vector<1x32x64xf32>
    tpu.vector_store %arg6[%c0_12, %c0_13, %c0_14], %33 {strides = array<i32>} : memref<1x32x64xf32, #tpu.memory_space<vmem>>, vector<1x32x64xf32>,
    return
  }
  func.func @transform_0(%arg0: i32, %arg1: i32) -> (i32, i32, i32) {
    %c0_i32 = arith.constant 0 : i32
    %c0_i32_0 = arith.constant 0 : i32
    return %arg0, %arg1, %c0_i32 : i32, i32, i32
  }
  func.func @transform_1(%arg0: i32, %arg1: i32) -> (i32, i32, i32) {
    %c0_i32 = arith.constant 0 : i32
    %c0_i32_0 = arith.constant 0 : i32
    return %arg0, %c0_i32, %arg1 : i32, i32, i32
  }
  func.func @transform_2(%arg0: i32, %arg1: i32) -> (i32, i32) {
    %c0_i32 = arith.constant 0 : i32
    %c0_i32_0 = arith.constant 0 : i32
    %c0_i32_1 = arith.constant 0 : i32
    return %c0_i32, %c0_i32_0 : i32, i32
  }
  func.func @transform_3(%arg0: i32, %arg1: i32) -> (i32, i32, i32) {
    %c0_i32 = arith.constant 0 : i32
    %c0_i32_0 = arith.constant 0 : i32
    return %arg0, %c0_i32, %arg1 : i32, i32, i32
  }
  func.func @transform_4(%arg0: i32, %arg1: i32) -> (i32, i32, i32) {
    %c0_i32 = arith.constant 0 : i32
    %c0_i32_0 = arith.constant 0 : i32
    return %arg0, %c0_i32, %arg1 : i32, i32, i32
  }
}

module attributes {stable_mosaic.version = 11 : i64} {
  func.func @_tri_fullk_kernel(%arg0: i32, %arg1: i32, %arg2: i32, %arg3: memref<1x32x8x8xf32, #tpu.memory_space<vmem>>, %arg4: memref<1x32x8x8xf32, #tpu.memory_space<vmem>>, %arg5: memref<1x32x8x8xf32, #tpu.memory_space<vmem>>) attributes {dimension_semantics = [#tpu.dimension_semantics<parallel>, #tpu.dimension_semantics<parallel>, #tpu.dimension_semantics<parallel>], iteration_bounds = array<i64: 2, 1, 1>, scalar_prefetch = 0 : i64, scratch_operands = 0 : i64, tpu.core_type = #tpu.core_type<tc>, window_params = [{transform_indices = @transform_0, window_bounds = array<i64: 1, 32, 8, 8>}, {transform_indices = @transform_1, window_bounds = array<i64: 1, 32, 8, 8>}, {transform_indices = @transform_2, window_bounds = array<i64: 1, 32, 8, 8>}]} {
    %c0 = arith.constant 0 : index
    %c0_0 = arith.constant 0 : index
    %c0_1 = arith.constant 0 : index
    %c0_2 = arith.constant 0 : index
    %0 = vector.load %arg3[%c0, %c0_0, %c0_1, %c0_2] : memref<1x32x8x8xf32, #tpu.memory_space<vmem>>, vector<1x32x8x8xf32>
    %1 = vector.shape_cast %0 : vector<1x32x8x8xf32> to vector<32x8x8xf32>
    %c0_3 = arith.constant 0 : index
    %c0_4 = arith.constant 0 : index
    %c0_5 = arith.constant 0 : index
    %c0_6 = arith.constant 0 : index
    %2 = vector.load %arg4[%c0_3, %c0_4, %c0_5, %c0_6] : memref<1x32x8x8xf32, #tpu.memory_space<vmem>>, vector<1x32x8x8xf32>
    %3 = vector.shape_cast %2 : vector<1x32x8x8xf32> to vector<32x8x8xf32>
    "tpu.trace_start"() <{level = 10 : i32, message = "cik,ckj->cij"}> : () -> ()
    %cst = arith.constant dense<0.000000e+00> : vector<32x8x8xf32>
    %4 = tpu.matmul %1, %3, %cst {dimension_numbers = #tpu.dot_dimension_numbers<[2], [1], [1], [2], [0, 0, 0, 1, 1, 2], [0], [0]>} : vector<32x8x8xf32>, vector<32x8x8xf32>, vector<32x8x8xf32> -> vector<32x8x8xf32>
    "tpu.trace_stop"() : () -> ()
    %c0_7 = arith.constant 0 : index
    %c0_8 = arith.constant 0 : index
    %c0_9 = arith.constant 0 : index
    %c0_10 = arith.constant 0 : index
    %5 = vector.load %arg5[%c0_7, %c0_8, %c0_9, %c0_10] : memref<1x32x8x8xf32, #tpu.memory_space<vmem>>, vector<1x32x8x8xf32>
    %6 = vector.shape_cast %5 : vector<1x32x8x8xf32> to vector<32x8x8xf32>
    %7 = vector.shape_cast %4 : vector<32x8x8xf32> to vector<1x32x8x8xf32>
    tpu.vector_store %arg5[%c0_7, %c0_8, %c0_9, %c0_10], %7 {strides = array<i32>} : memref<1x32x8x8xf32, #tpu.memory_space<vmem>>, vector<1x32x8x8xf32>,
    return
  }
  func.func @transform_0(%arg0: i32, %arg1: i32, %arg2: i32) -> (i32, i32, i32, i32) {
    %c0_i32 = arith.constant 0 : i32
    %c0_i32_0 = arith.constant 0 : i32
    return %arg0, %arg1, %arg2, %c0_i32 : i32, i32, i32, i32
  }
  func.func @transform_1(%arg0: i32, %arg1: i32, %arg2: i32) -> (i32, i32, i32, i32) {
    %c0_i32 = arith.constant 0 : i32
    %c0_i32_0 = arith.constant 0 : i32
    %c0_i32_1 = arith.constant 0 : i32
    return %arg0, %arg1, %c0_i32, %c0_i32_0 : i32, i32, i32, i32
  }
  func.func @transform_2(%arg0: i32, %arg1: i32, %arg2: i32) -> (i32, i32, i32, i32) {
    %c0_i32 = arith.constant 0 : i32
    %c0_i32_0 = arith.constant 0 : i32
    return %arg0, %arg1, %arg2, %c0_i32 : i32, i32, i32, i32
  }
}

module attributes {stable_mosaic.version = 11 : i64} {
  func.func @_out_kernel(%arg0: i32, %arg1: i32, %arg2: memref<1x64x32xf32, #tpu.memory_space<vmem>>, %arg3: memref<1x64x32xf32, #tpu.memory_space<vmem>>, %arg4: memref<32x32xf32, #tpu.memory_space<vmem>>, %arg5: memref<32x32xf32, #tpu.memory_space<vmem>>, %arg6: memref<1x32xf32, #tpu.memory_space<vmem>>, %arg7: memref<1x32xf32, #tpu.memory_space<vmem>>, %arg8: memref<1x64x32xf32, #tpu.memory_space<vmem>>) attributes {dimension_semantics = [#tpu.dimension_semantics<parallel>, #tpu.dimension_semantics<parallel>], iteration_bounds = array<i64: 2, 1>, scalar_prefetch = 0 : i64, scratch_operands = 0 : i64, tpu.core_type = #tpu.core_type<tc>, window_params = [{transform_indices = @transform_0, window_bounds = array<i64: 1, 64, 32>}, {transform_indices = @transform_1, window_bounds = array<i64: 1, 64, 32>}, {pipeline_mode = #tpu.pipeline_mode<synchronous>, transform_indices = @transform_2, window_bounds = array<i64: 32, 32>}, {pipeline_mode = #tpu.pipeline_mode<synchronous>, transform_indices = @transform_3, window_bounds = array<i64: 32, 32>}, {pipeline_mode = #tpu.pipeline_mode<synchronous>, transform_indices = @transform_4, window_bounds = array<i64: 1, 32>}, {pipeline_mode = #tpu.pipeline_mode<synchronous>, transform_indices = @transform_5, window_bounds = array<i64: 1, 32>}, {transform_indices = @transform_6, window_bounds = array<i64: 1, 64, 32>}]} {
    %c0 = arith.constant 0 : index
    %c0_0 = arith.constant 0 : index
    %c0_1 = arith.constant 0 : index
    %0 = vector.load %arg2[%c0, %c0_0, %c0_1] : memref<1x64x32xf32, #tpu.memory_space<vmem>>, vector<1x64x32xf32>
    %1 = vector.shape_cast %0 : vector<1x64x32xf32> to vector<64x32xf32>
    %cst = arith.constant dense<0.000000e+00> : vector<64xf32>
    %2 = vector.multi_reduction <add>, %1, %cst [1] : vector<64x32xf32> to vector<64xf32>
    %3 = vector.shape_cast %2 : vector<64xf32> to vector<64x1xf32>
    %cst_2 = arith.constant 3.200000e+01 : f32
    %4 = vector.broadcast %cst_2 : f32 to vector<64x1xf32>
    %5 = arith.divf %3, %4 : vector<64x1xf32>
    %6 = vector.broadcast %5 : vector<64x1xf32> to vector<64x32xf32>
    %7 = arith.subf %1, %6 : vector<64x32xf32>
    %8 = arith.mulf %7, %7 : vector<64x32xf32>
    %cst_3 = arith.constant dense<0.000000e+00> : vector<64xf32>
    %9 = vector.multi_reduction <add>, %8, %cst_3 [1] : vector<64x32xf32> to vector<64xf32>
    %10 = vector.shape_cast %9 : vector<64xf32> to vector<64x1xf32>
    %cst_4 = arith.constant 3.200000e+01 : f32
    %11 = vector.broadcast %cst_4 : f32 to vector<64x1xf32>
    %12 = arith.divf %10, %11 : vector<64x1xf32>
    %13 = vector.broadcast %5 : vector<64x1xf32> to vector<64x32xf32>
    %14 = arith.subf %1, %13 : vector<64x32xf32>
    %cst_5 = arith.constant 9.99999974E-6 : f32
    %15 = vector.broadcast %cst_5 : f32 to vector<64x1xf32>
    %16 = arith.addf %12, %15 : vector<64x1xf32>
    %17 = math.rsqrt %16 : vector<64x1xf32>
    %18 = vector.broadcast %17 : vector<64x1xf32> to vector<64x32xf32>
    %19 = arith.mulf %14, %18 : vector<64x32xf32>
    %c0_6 = arith.constant 0 : index
    %c0_7 = arith.constant 0 : index
    %20 = vector.load %arg6[%c0_6, %c0_7] : memref<1x32xf32, #tpu.memory_space<vmem>>, vector<1x32xf32>
    %21 = vector.broadcast %20 : vector<1x32xf32> to vector<64x32xf32>
    %22 = arith.mulf %19, %21 : vector<64x32xf32>
    %c0_8 = arith.constant 0 : index
    %c0_9 = arith.constant 0 : index
    %23 = vector.load %arg7[%c0_8, %c0_9] : memref<1x32xf32, #tpu.memory_space<vmem>>, vector<1x32xf32>
    %24 = vector.broadcast %23 : vector<1x32xf32> to vector<64x32xf32>
    %25 = arith.addf %22, %24 : vector<64x32xf32>
    %c0_10 = arith.constant 0 : index
    %c0_11 = arith.constant 0 : index
    %26 = vector.load %arg4[%c0_10, %c0_11] : memref<32x32xf32, #tpu.memory_space<vmem>>, vector<32x32xf32>
    %cst_12 = arith.constant dense<0.000000e+00> : vector<64x32xf32>
    %27 = tpu.matmul %25, %26, %cst_12 {dimension_numbers = #tpu.dot_dimension_numbers<[1], [0], [0], [1], [0, 0, 1, 1], [], []>} : vector<64x32xf32>, vector<32x32xf32>, vector<64x32xf32> -> vector<64x32xf32>
    %c0_13 = arith.constant 0 : index
    %c0_14 = arith.constant 0 : index
    %c0_15 = arith.constant 0 : index
    %28 = vector.load %arg3[%c0_13, %c0_14, %c0_15] : memref<1x64x32xf32, #tpu.memory_space<vmem>>, vector<1x64x32xf32>
    %29 = vector.shape_cast %28 : vector<1x64x32xf32> to vector<64x32xf32>
    %c0_16 = arith.constant 0 : index
    %c0_17 = arith.constant 0 : index
    %30 = vector.load %arg5[%c0_16, %c0_17] : memref<32x32xf32, #tpu.memory_space<vmem>>, vector<32x32xf32>
    %cst_18 = arith.constant dense<0.000000e+00> : vector<64x32xf32>
    %31 = tpu.matmul %29, %30, %cst_18 {dimension_numbers = #tpu.dot_dimension_numbers<[1], [0], [0], [1], [0, 0, 1, 1], [], []>} : vector<64x32xf32>, vector<32x32xf32>, vector<64x32xf32> -> vector<64x32xf32>
    %32 = arith.negf %31 : vector<64x32xf32>
    %33 = math.exp %32 : vector<64x32xf32>
    %cst_19 = arith.constant 1.000000e+00 : f32
    %34 = vector.broadcast %cst_19 : f32 to vector<64x32xf32>
    %35 = arith.addf %34, %33 : vector<64x32xf32>
    %36 = arith.divf %34, %35 : vector<64x32xf32>
    %37 = arith.mulf %27, %36 : vector<64x32xf32>
    %c0_20 = arith.constant 0 : index
    %c0_21 = arith.constant 0 : index
    %c0_22 = arith.constant 0 : index
    %38 = vector.load %arg8[%c0_20, %c0_21, %c0_22] : memref<1x64x32xf32, #tpu.memory_space<vmem>>, vector<1x64x32xf32>
    %39 = vector.shape_cast %38 : vector<1x64x32xf32> to vector<64x32xf32>
    %40 = vector.shape_cast %37 : vector<64x32xf32> to vector<1x64x32xf32>
    tpu.vector_store %arg8[%c0_20, %c0_21, %c0_22], %40 {strides = array<i32>} : memref<1x64x32xf32, #tpu.memory_space<vmem>>, vector<1x64x32xf32>,
    return
  }
  func.func @transform_0(%arg0: i32, %arg1: i32) -> (i32, i32, i32) {
    %c0_i32 = arith.constant 0 : i32
    %c0_i32_0 = arith.constant 0 : i32
    return %arg0, %arg1, %c0_i32 : i32, i32, i32
  }
  func.func @transform_1(%arg0: i32, %arg1: i32) -> (i32, i32, i32) {
    %c0_i32 = arith.constant 0 : i32
    %c0_i32_0 = arith.constant 0 : i32
    return %arg0, %arg1, %c0_i32 : i32, i32, i32
  }
  func.func @transform_2(%arg0: i32, %arg1: i32) -> (i32, i32) {
    %c0_i32 = arith.constant 0 : i32
    %c0_i32_0 = arith.constant 0 : i32
    %c0_i32_1 = arith.constant 0 : i32
    return %c0_i32, %c0_i32_0 : i32, i32
  }
  func.func @transform_3(%arg0: i32, %arg1: i32) -> (i32, i32) {
    %c0_i32 = arith.constant 0 : i32
    %c0_i32_0 = arith.constant 0 : i32
    %c0_i32_1 = arith.constant 0 : i32
    return %c0_i32, %c0_i32_0 : i32, i32
  }
  func.func @transform_4(%arg0: i32, %arg1: i32) -> (i32, i32) {
    %c0_i32 = arith.constant 0 : i32
    %c0_i32_0 = arith.constant 0 : i32
    %c0_i32_1 = arith.constant 0 : i32
    return %c0_i32, %c0_i32_0 : i32, i32
  }
  func.func @transform_5(%arg0: i32, %arg1: i32) -> (i32, i32) {
    %c0_i32 = arith.constant 0 : i32
    %c0_i32_0 = arith.constant 0 : i32
    %c0_i32_1 = arith.constant 0 : i32
    return %c0_i32, %c0_i32_0 : i32, i32
  }
  func.func @transform_6(%arg0: i32, %arg1: i32) -> (i32, i32, i32) {
    %c0_i32 = arith.constant 0 : i32
    %c0_i32_0 = arith.constant 0 : i32
    return %arg0, %arg1, %c0_i32 : i32, i32, i32
  }
}

</mosaic_0001>

<bundles_post_ra>
// kernel: triangle_multiplication.3
= control target key start
LH: loop header
LB: loop body
LE: loop exit
PB: predicated region body
PF: predicated region fallthrough
CT: control target
= control target key end

     0   :  { %10 = vsyncpa [#allocation3], 0  ;;  %s1235_s0 = inlined_call_operand.hbm [shape: f32[2,64,32], index: 0, kind: input, shape index: {}]   ;;  %s1236_s1 = inlined_call_operand.vmem [shape: f32[2,1,64], index: 1, kind: input, shape index: {}]   ;;  %s1237_s2 = inlined_call_operand.vmem [shape: f32[32,128], index: 2, kind: input, shape index: {}]   ;;  %s1238_s3 = inlined_call_operand.vmem [shape: f32[2,32,64], index: 3, kind: output, shape index: {0}]   ;;  %s1239_s4 = inlined_call_operand.vmem [shape: f32[2,32,64], index: 4, kind: output, shape index: {1}]  }
   0x1   :  { %12 = vsyncpa [#allocation3 + $0x1], 0  ;;  %s1067_s15 = smov 0   ;;  %s1069_s16 = smov 0  }
   0x2   :  { %s1071_s17 = smov 0   ;;  %s1073_s18 = smov 0  }
   0x3   :  { %s1075_s19 = smov 0   ;;  %s1077_s20 = smov 0  }
   0x4 LB: > { %s790_s21 = sadd.s32 4294967295, %s1035_s20   ;;  %s30_s22 = sadd.s32 1, %s1031_s19  ;;  %s1035_s20 = sphi %s1077_s20, %s18_s20   ;;  %s1031_s19 = sphi %s1075_s19, %s1247_s19   ;;  %s1027_s18 = sphi %s1073_s18, %s1246_s18   ;;  %s1023_s17 = sphi %s1071_s17, %s1245_s17   ;;  %s1019_s16 = sphi %s1069_s16, %s1244_s16   ;;  %s1015_s15 = sphi %s1067_s15, %s1243_s15  }
   0x5   : > { %p32_p0 = scmp.ge.s32.totalorder %s30_s22, 2  ;;  %s39_s23 = sadd.s32 1, %s1023_s17 }
   0x6   : > { %p46_p1 = scmp.ne.s32.totalorder %s1023_s17, %s1019_s16  ;;  %p47_p2 = scmp.eq.s32.totalorder %s1035_s20, 0 }
   0x7   : > { %s1249_s22 = smov (%p32_p0, %s30_s22), 0  ;;  %p52_p4 = scmp.ne.s32.totalorder %s1019_s16, %s1015_s15 }
   0x8   : > { %p1103_p3 = por %p47_p2, %p46_p1  ;;  %s34_s25 = ssub.s32 %s1031_s19, %s1249_s22 }
   0x9   : > { %p53_p5 = scmp.eq.s32.totalorder %s790_s21, 0  ;;  %p37_p6 = scmp.eq.s32.totalorder %s34_s25, 0 }
   0xa   : > { %p871_p8 = scmp.lt.s32.totalorder %s1035_s20, 2  ;;  %s184_s28 = sand.u32 1, %s1023_s17  }
   0xb   : > { %p1110_p7 = por %p53_p5, %p52_p4  ;;  %s822_s29 = sshll.u32 %s1031_s19, 10 }
   0xc   : > { %s1116_s27 = scalar_select %p37_p6, %s1023_s17, %s39_s23  }
   0xd   : > { %s794_s30 = sshll.u32 %s184_s28, 6  ;;  %s196_s7 = scalar_lea.hbm %s1235_s0, %s822_s29 }
   0xe   : > { %s188_s8 = scalar_lea.vmem [#allocation2], %s794_s30  ;;  %p1125_p9 = pnand %p871_p8, %p1103_p3 }
   0xf   : > { %s197_s9 = sshll.u32 %s188_s8, 4  ;;  %s185_s11 = scalar_lea.sflag [#allocation3], %s184_s28  ;;  %s198_s9 = int_to_ptr.vmem [resolvable:$true] %s197_s9 }
  0x10   : > { %p959_p10 = pneg %p1125_p9  ;;  %s970_s12 = scalar_lea.vmem %s198_s9, 1024 }
  0x11   : > { %p971_p11 = scmp.ne.s32.totalorder %s198_s9, %s970_s12  ;;  %s1037_s13 = smov [#allocation2]  }
  0x12   : > { %s975_s14 = sshll.u32 %s1037_s13, 4  ;;  %s976_s14 = int_to_ptr.vmem [resolvable:$false] %s975_s14 }
  0x13   : > { %p973_p12 = pnand %p971_p11, %p959_p10  ;;  %s977_s15 = scalar_lea.vmem %s976_s14, 2048 }
  0x14   : > { %p978_p0 = scmp.lt.s32.totalorder %s198_s9, %s976_s14  ;;  %p979_p1 = scmp.lt.s32.totalorder %s977_s15, %s970_s12 }
  0x15   : > { %p974_p13 = pneg %p973_p12 }
  0x16   : > { %p980_p2 = por %p979_p1, %p978_p0 }
  0x18   : > { %p981_p3 = pnand %p980_p2, %p974_p13 }
  0x1a   : > { %984 = shalt.err (!%p981_p3)
}
  0x1b   : > { %s1038_s21 = smov 128   ;;  %s1039_s23 = smov 8  }
  0x1c   : > { %870 = dma.hbm_to_vmem [thread:$0]  (!%p1125_p9), %s196_s7, 1024, %s198_s9, %s185_s11, %s1038_s21, %s1038_s21, %s1039_s23  }
  0x1d   : > { %p797_p4 = scmp.ge.s32.totalorder %s1035_s20, 1  ;;  %p214_p5 = scmp.lt.s32.totalorder %s1035_s20, 3 }
  0x1f   : > { %p215_p6 = pnand %p797_p4, %p214_p5 }
  0x20   : > { %s220_s24 = sand.u32 (!%p215_p6), 1, %s1019_s16  }
  0x21   : > { %218 = sbr.rel (%p215_p6) target bundleno = 647 (0x287), region = 32  ;;  %s798_s25 = sshll.u32 (!%p215_p6), %s220_s24, 6 }
  0x22   : > { %s221_s28 = scalar_lea.sflag (!%p215_p6), [#allocation3], %s220_s24  ;;  %s1136_s29 = scalar_lea.vmem (!%p215_p6), [#allocation2], %s798_s25 }
  0x26   : > { %1010 = dma.done.wait (%p1110_p7), %s221_s28, 1024  }
  0x27   : > { %1012 = vsyncadd (%p1110_p7), %s221_s28, 4294966272  ;;  %vm301_vm0 = vcmask 261120   ;;  %v300_v0 = vld [vmem:[%s1237_s2 + $0x18] sm:$0xff]  ;;  %v299_v1 = vld [vmem:[%s1237_s2 + $0x10] sm:$0xff]  ;;  %s1040_s11 = smov 64   ;;  %s1041_s12 = smov 96  }
  0x28   : > { %837 = vmatprep.subr.mxu0 %v300_v0  ;;  %v289_v2 = vld [vmem:[%s1136_s29] sm:$0xff]  ;;  %857 = vmatprep.subr.mxu1 %v300_v0  ;;  %v298_v3 = vld [vmem:[%s1237_s2 + $0x8] sm:$0xff]  ;;  %v291_v6 = vld [vmem:[%s1136_s29 + $0x10] sm:$0xff]  ;;  %p267_p7 = scmp.lt.s32.totalorder %s1027_s18, 1  ;;  %vm562_vm1 = vcmask 523264  }
  0x29   : > { %838 = vmatpush3.msra.mxu0 %v300_v0  ;;  %845 = vmatprep.mubr.msk.f32.mxu0 %vm301_vm0, %v289_v2  ;;  %v297_v4 = vld [vmem:[%s1237_s2] sm:$0xff]  ;;  %v290_v5 = vld [vmem:[%s1136_s29 + $0x8] sm:$0xff]  ;;  %v295_v9 = vld [vmem:[%s1136_s29 + $0x30] sm:$0xff] }
  0x2a   : > { %839 = vmatprep.subr.mxu0 %v299_v1  ;;  %861 = vmatpush3.msra.mxu1 %v300_v0  ;;  %v293_v7 = vld [vmem:[%s1136_s29 + $0x20] sm:$0xff]  ;;  %v294_v8 = vld [vmem:[%s1136_s29 + $0x28] sm:$0xff]  ;;  %v292_v10 = vld [vmem:[%s1136_s29 + $0x18] sm:$0xff]  ;;  %s1251_s18 = smov (!%p267_p7, %s1027_s18), 1 }
  0x2b   : > { %840 = vmatpush3.msra.mxu0 %v299_v1  ;;  %858 = vmatprep.subr.mxu1 %v299_v1  ;;  %v296_v11 = vld [vmem:[%s1136_s29 + $0x38] sm:$0xff]  ;;  %s272_s15 = scalar_lea.vmem %s1236_s1, %s1251_s18  ;;  %s823_s21 = sshll.u32 %s1251_s18, 5 }
  0x2c   : > { %841 = vmatprep.subr.mxu0 %v298_v3  ;;  %862 = vmatpush3.msra.mxu1 %v299_v1  ;;  %s280_s25 = scalar_lea.vmem %s1238_s3, %s823_s21  ;;  %s288_s29 = scalar_lea.vmem %s1239_s4, %s823_s21 }
  0x2d   : > { %842 = vmatpush3.msra.mxu0 %v298_v3  ;;  %859 = vmatprep.subr.mxu1 %v298_v3 }
  0x2e   : > { %843 = vmatprep.subr.mxu0 %v297_v4  ;;  %863 = vmatpush3.msra.mxu1 %v298_v3 }
  0x2f   : > { %844 = vmatpush3.msra.mxu0 %v297_v4  ;;  %860 = vmatprep.subr.mxu1 %v297_v4 }
  0x30   : > { %846 = vmatmul.mubr.msk.f32.vlgmr.msra.gmra.mxu0 %vm301_vm0, %v290_v5  ;;  %864 = vmatpush3.msra.mxu1 %v297_v4 }
  0x31   : > { %848 = vmatprep.mubr.msk.f32.mxu0 %vm301_vm0, %v291_v6  ;;  %851 = vmatprep.mubr.msk.f32.mxu1 %vm301_vm0, %v293_v7 }
  0x32   : > { %852 = vmatmul.mubr.msk.f32.vlgmr.msra.gmra.mxu1 %vm301_vm0, %v294_v8 }
  0x33   : > { %854 = vmatprep.mubr.msk.f32.mxu1 %vm301_vm0, %v295_v9 }
  0x34   : > { %849 = vmatmul.mubr.msk.f32.gmra.mxu0 %vm301_vm0, %v292_v10 }
  0x36   : > { %855 = vmatmul.mubr.msk.f32.gmra.mxu1 %vm301_vm0, %v296_v11 }
  0xf0   : > { %v1170_v12 = vpop.f32.mrf.mxu0 }
  0xf1   : > { %v812_v13 = vmul.f32 -1.442695, %v1170_v12 }
  0xf2   : > { %v1173_v14 = vpop.f32.mrf.mxu0  ;;  %v1175_v15 = vpop.f32.mrf.mxu1 }
  0xf3   : > { %v811_v16 = vmul.f32 -1.442695, %v1173_v14  ;;  %925 = vpow2.f32 %v812_v13  ;;  %v816_v22 = vmul.f32 -1.442695, %v1175_v15 }
  0xf4   : > { %v1178_v17 = vpop.f32.mrf.mxu0  ;;  %v1180_v18 = vpop.f32.mrf.mxu1 }
  0xf5   : > { %927 = vpow2.f32 %v811_v16  ;;  %v814_v19 = vmul.f32 -1.442695, %v1178_v17  ;;  %v815_v20 = vmul.f32 -1.442695, %v1180_v18 }
  0xf6   : > { %v402_v21 = vpop.f32.mrf.mxu0  ;;  %v1185_v23 = vpop.f32.mrf.mxu1 }
  0xf7   : > { %929 = vpow2.f32 %v814_v19  ;;  %v813_v24 = vmul.f32 -1.442695, %v402_v21  ;;  %v818_v27 = vmul.f32 -1.442695, %v1185_v23 }
  0xf8   : > { %931 = vpow2.f32 %v815_v20  ;;  %v1187_v25 = vpop.f32.mrf.mxu1 }
  0xf9   : > { %933 = vpow2.f32 %v813_v24  ;;  %v817_v26 = vmul.f32 -1.442695, %v1187_v25 }
  0xfa   : > { %935 = vpow2.f32 %v816_v22 }
  0xfb   : > { %937 = vpow2.f32 %v817_v26 }
  0xfc   : > { %939 = vpow2.f32 %v818_v27 }
 0x100   : > { %v926_v28 = vpop.eup %925 }
 0x101   : > { %v456_v32 = vadd.f32 1.0, %v926_v28 }
 0x102   : > { %v928_v29 = vpop.eup %927 }
 0x103   : > { %v455_v30 = vadd.f32 1.0, %v928_v29 }
 0x104   : > { %v930_v31 = vpop.eup %929 }
 0x105   : > { %v932_v33 = vpop.eup %931  ;;  %941 = vrcp.f32 %v455_v30  ;;  %v458_v39 = vadd.f32 1.0, %v930_v31 }
 0x106   : > { %v934_v34 = vpop.eup %933  ;;  %v459_v37 = vadd.f32 1.0, %v932_v33  ;;  %943 = vrcp.f32 %v456_v32 }
 0x107   : > { %v936_v35 = vpop.eup %935  ;;  %v457_v36 = vadd.f32 1.0, %v934_v34 }
 0x108   : > { %v938_v38 = vpop.eup %937  ;;  %v460_v40 = vadd.f32 1.0, %v936_v35 }
 0x109   : > { %945 = vrcp.f32 %v457_v36  ;;  %v461_v41 = vadd.f32 1.0, %v938_v38  ;;  %v940_v42 = vpop.eup %939 }
 0x10a   : > { %947 = vrcp.f32 %v459_v37  ;;  %v462_v43 = vadd.f32 1.0, %v940_v42 }
 0x10b   : > { %949 = vrcp.f32 %v458_v39 }
 0x10c   : > { %951 = vrcp.f32 %v460_v40 }
 0x10d   : > { %953 = vrcp.f32 %v461_v41 }
 0x10e   : > { %955 = vrcp.f32 %v462_v43 }
 0x112   : > { %v942_v44 = vpop.eup %941 }
 0x113   : > { %487 = vrot.lane.b32.xlu0 %v942_v44, %s1040_s11  ;;  %v944_v45 = vpop.eup %943 }
 0x116   : > { %v946_v46 = vpop.eup %945 }
 0x117   : > { %489 = vrot.lane.b32.xlu0 %v944_v45, %s1040_s11  ;;  %491 = vrot.lane.b32.xlu1 %v946_v46, %s1040_s11  ;;  %v948_v47 = vpop.eup %947 }
 0x118   : > { %v950_v48 = vpop.eup %949 }
 0x119   : > { %v952_v49 = vpop.eup %951 }
 0x11a   : > { %v954_v50 = vpop.eup %953 }
 0x11b   : > { %495 = vrot.lane.b32.xlu0 %v948_v47, %s1040_s11  ;;  %493 = vrot.lane.b32.xlu1 %v950_v48, %s1040_s11  ;;  %v956_v51 = vpop.eup %955 }
 0x11f   : > { %499 = vrot.lane.b32.xlu0 %v954_v50, %s1040_s11  ;;  %497 = vrot.lane.b32.xlu1 %v952_v49, %s1040_s11 }
 0x123   : > { %501 = vrot.lane.b32.xlu1 %v956_v51, %s1040_s11 }
 0x185   : > { %v488_v52 = vpop.permute.xlu0 %487 }
 0x186   : > { %v511_v53 = vmul.f32 %v488_v52, %v1173_v14 }
 0x188   : > { %575 = vrot.lane.b32.xlu0 %v511_v53, %s1041_s12 }
 0x189   : > { %v490_v54 = vpop.permute.xlu0 %489  ;;  %v492_v55 = vpop.permute.xlu1 %491 }
 0x18a   : > { %v512_v56 = vmul.f32 %v1170_v12, %v490_v54  ;;  %v513_v57 = vmul.f32 %v492_v55, %v402_v21  ;;  %v819_v12 = vld [vmem:[%s272_s15] ss:$0 sm:$0xff] }
 0x18c   : > { %577 = vrot.lane.b32.xlu1 %v512_v56, %s1041_s12  ;;  %579 = vrot.lane.b32.xlu0 %v513_v57, %s1041_s12 }
 0x18d   : > { %v496_v58 = vpop.permute.xlu0 %495  ;;  %v494_v59 = vpop.permute.xlu1 %493 }
 0x18e   : > { %v515_v60 = vmul.f32 %v496_v58, %v1180_v18  ;;  %v514_v61 = vmul.f32 %v1178_v17, %v494_v59 }
 0x190   : > { %583 = vrot.lane.b32.xlu0 %v515_v60, %s1041_s12  ;;  %581 = vrot.lane.b32.xlu1 %v514_v61, %s1041_s12 }
 0x191   : > { %v500_v62 = vpop.permute.xlu0 %499  ;;  %v498_v63 = vpop.permute.xlu1 %497 }
 0x192   : > { %v517_v0 = vmul.f32 %v500_v62, %v1187_v25  ;;  %v516_v1 = vmul.f32 %v1175_v15, %v498_v63 }
 0x194   : > { %587 = vrot.lane.b32.xlu0 %v517_v0, %s1041_s12  ;;  %585 = vrot.lane.b32.xlu1 %v516_v1, %s1041_s12 }
 0x195   : > { %v502_v2 = vpop.permute.xlu1 %501 }
 0x196   : > { %v518_v3 = vmul.f32 %v1185_v23, %v502_v2 }
 0x198   : > { %589 = vrot.lane.b32.xlu1 %v518_v3, %s1041_s12 }
 0x1b2   : > { %520 = vxpose.xlu0.b32.start [1/8] (short) (narrow) %v511_v53, 32 }
 0x1b6   : > { %521 = vxpose.xlu0.b32.cont [2/8] (short) (narrow) %v512_v56, 32 }
 0x1ba   : > { %522 = vxpose.xlu0.b32.cont [3/8] (short) (narrow) %v513_v57, 32 }
 0x1be   : > { %523 = vxpose.xlu0.b32.cont [4/8] (short) (narrow) %v514_v61, 32 }
 0x1c2   : > { %524 = vxpose.xlu0.b32.cont [5/8] (short) (narrow) %v515_v60, 32 }
 0x1c6   : > { %525 = vxpose.xlu0.b32.cont [6/8] (short) (narrow) %v516_v1, 32 }
 0x1ca   : > { %526 = vxpose.xlu0.b32.cont [7/8] (short) (narrow) %v517_v0, 32 }
 0x1ce   : > { %527 = vxpose.xlu0.b32.end [8/8] (short) (narrow) %v518_v3, 32 }
 0x1fa   : > { %v576_v4 = vpop.permute.xlu0 %575 }
 0x1fb   : > { %599 = vxpose.xlu1.b32.start [1/8] (short) (narrow) %v576_v4, 32 }
 0x1fe   : > { %v578_v5 = vpop.permute.xlu1 %577  ;;  %v580_v6 = vpop.permute.xlu0 %579 }
 0x1ff   : > { %600 = vxpose.xlu1.b32.cont [2/8] (short) (narrow) %v578_v5, 32 }
 0x202   : > { %v582_v7 = vpop.permute.xlu1 %581  ;;  %v584_v8 = vpop.permute.xlu0 %583 }
 0x203   : > { %601 = vxpose.xlu1.b32.cont [3/8] (short) (narrow) %v580_v6, 32 }
 0x206   : > { %v586_v9 = vpop.permute.xlu1 %585  ;;  %v588_v10 = vpop.permute.xlu0 %587 }
 0x207   : > { %602 = vxpose.xlu1.b32.cont [4/8] (short) (narrow) %v582_v7, 32 }
 0x20a   : > { %v590_v11 = vpop.permute.xlu1 %589 }
 0x20b   : > { %603 = vxpose.xlu1.b32.cont [5/8] (short) (narrow) %v584_v8, 32 }
 0x20f   : > { %604 = vxpose.xlu1.b32.cont [6/8] (short) (narrow) %v586_v9, 32 }
 0x213   : > { %605 = vxpose.xlu1.b32.cont [7/8] (short) (narrow) %v588_v10, 32 }
 0x217   : > { %606 = vxpose.xlu1.b32.end [8/8] (short) (narrow) %v590_v11, 32 }
 0x22e   : > { %v536_v13 = vpop.trf.xlu0 }
 0x22f   : > { %v558_v14 = vmul.f32 %v819_v12, %v536_v13 }
 0x231   : > { %563 = vst.msk [vmem:[%s280_s25] sm:$0xff] %vm562_vm1, %v558_v14 }
 0x232   : > { %v537_v15 = vpop.trf.xlu0 }
 0x233   : > { %v559_v16 = vmul.f32 %v819_v12, %v537_v15 }
 0x235   : > { %564 = vst.msk [vmem:[%s280_s25 + $0x8] sm:$0xff] %vm562_vm1, %v559_v16 }
 0x236   : > { %v538_v17 = vpop.trf.xlu0 }
 0x237   : > { %v560_v18 = vmul.f32 %v819_v12, %v538_v17 }
 0x239   : > { %565 = vst.msk [vmem:[%s280_s25 + $0x10] sm:$0xff] %vm562_vm1, %v560_v18 }
 0x23a   : > { %v539_v19 = vpop.trf.xlu0 }
 0x23b   : > { %v561_v20 = vmul.f32 %v819_v12, %v539_v19 }
 0x23d   : > { %566 = vst.msk [vmem:[%s280_s25 + $0x18] sm:$0xff] %vm562_vm1, %v561_v20 }
 0x277   : > { %v615_v21 = vpop.trf.xlu1 }
 0x278   : > { %v631_v22 = vmul.f32 %v819_v12, %v615_v21 }
 0x27a   : > { %635 = vst.msk [vmem:[%s288_s29] sm:$0xff] %vm562_vm1, %v631_v22 }
 0x27b   : > { %v616_v23 = vpop.trf.xlu1 }
 0x27c   : > { %v632_v24 = vmul.f32 %v819_v12, %v616_v23 }
 0x27e   : > { %636 = vst.msk [vmem:[%s288_s29 + $0x8] sm:$0xff] %vm562_vm1, %v632_v24 }
 0x27f   : > { %v617_v25 = vpop.trf.xlu1 }
 0x280   : > { %v633_v26 = vmul.f32 %v819_v12, %v617_v25 }
 0x282   : > { %637 = vst.msk [vmem:[%s288_s29 + $0x10] sm:$0xff] %vm562_vm1, %v633_v26 }
 0x283   : > { %v618_v27 = vpop.trf.xlu1 }
 0x284   : > { %v634_v28 = vmul.f32 %v819_v12, %v618_v27 }
 0x286   : > { %638 = vst.msk [vmem:[%s288_s29 + $0x18] sm:$0xff] %vm562_vm1, %v634_v28 }
 0x287 PF: > { %s18_s20 = sadd.s32 1, %s1035_s20   ;;  %s1243_s15 = smov %s1019_s16 }
 0x288   : > { %p15_p8 = scmp.ge.s32.totalorder %s18_s20, 4   ;;  %s1244_s16 = smov %s1023_s17 }
 0x289   : > { %s1245_s17 = smov %s1116_s27  ;;  %s1246_s18 = smov %s1031_s19 }
 0x28a   : > { %s1247_s19 = smov %s1249_s22  ;;  %17 = sbr.rel (!%p15_p8) target bundleno = 4 (0x4), region = 87 }
 0x28f   :  { %688 = vsyncpa [#allocation3], 1 }
 0x290   :  { %690 = vsyncpa [#allocation3 + $0x1], 1 }

// kernel: triangle_multiplication.5
= control target key start
LH: loop header
LB: loop body
LE: loop exit
PB: predicated region body
PF: predicated region fallthrough
CT: control target
= control target key end

     0   :  { %11 = vsyncpa [#allocation3], 0  ;;  %s1497_s0 = inlined_call_operand.vmem [shape: f32[2,64,32], index: 0, kind: input, shape index: {}]   ;;  %s1498_s1 = inlined_call_operand.vmem [shape: f32[2,64,32], index: 1, kind: input, shape index: {}]   ;;  %s1499_s2 = inlined_call_operand.vmem [shape: f32[32,32], index: 2, kind: input, shape index: {}]   ;;  %s1500_s3 = inlined_call_operand.vmem [shape: f32[32,32], index: 3, kind: input, shape index: {}]   ;;  %s1501_s4 = inlined_call_operand.vmem [shape: f32[1,32], index: 4, kind: input, shape index: {}]   ;;  %s1502_s5 = inlined_call_operand.vmem [shape: f32[1,32], index: 5, kind: input, shape index: {}]   ;;  %s1503_s6 = inlined_call_operand.hbm [shape: f32[2,64,32], index: 6, kind: output, shape index: {}]  }
   0x1   :  { %13 = vsyncpa [#allocation3 + $0x1], 0  ;;  %s1241_s21 = smov 0   ;;  %s1243_s22 = smov 0  }
   0x2   :  { %s1245_s23 = smov 0   ;;  %s1247_s24 = smov 0  }
   0x3   :  { %s1249_s25 = smov 0   ;;  %s1251_s26 = smov 0  }
   0x4 LB: > { %s912_s27 = sadd.s32 4294967295, %s1201_s26   ;;  %s913_s28 = sadd.s32 4294967294, %s1201_s26   ;;  %s1201_s26 = sphi %s1251_s26, %s19_s26   ;;  %s1197_s25 = sphi %s1249_s25, %s1510_s25   ;;  %s1193_s24 = sphi %s1247_s24, %s1509_s24   ;;  %s1189_s23 = sphi %s1245_s23, %s1508_s23   ;;  %s1185_s22 = sphi %s1243_s22, %s1507_s22   ;;  %s1181_s21 = sphi %s1241_s21, %s1506_s21  }
   0x5   : > { %s31_s29 = sadd.s32 1, %s1197_s25  ;;  %s180_s30 = sadd.s32 1, %s1189_s23 }
   0x6   : > { %p33_p0 = scmp.ge.s32.totalorder %s31_s29, 2  ;;  %p190_p1 = scmp.ne.s32.totalorder %s1189_s23, %s1185_s22 }
   0x7   : > { %p191_p2 = scmp.eq.s32.totalorder %s912_s27, 1  ;;  %p196_p3 = scmp.ne.s32.totalorder %s1185_s22, %s1181_s21 }
   0x8   : > { %s1512_s29 = smov (%p33_p0, %s31_s29), 0  ;;  %p197_p5 = scmp.eq.s32.totalorder %s913_s28, 1 }
   0x9   : > { %p1281_p4 = por %p191_p2, %p190_p1  ;;  %s175_s8 = ssub.s32 %s1197_s25, %s1512_s29 }
   0xa   : > { %p916_p6 = scmp.ge.s32.totalorder %s1201_s26, 1  ;;  %p178_p7 = scmp.eq.s32.totalorder %s175_s8, 0 }
   0xb   : > { %p1288_p8 = por %p197_p5, %p196_p3  ;;  %p253_p9 = scmp.lt.s32.totalorder %s1201_s26, 3 }
   0xc   : > { %s1294_s10 = scalar_select %p178_p7, %s1189_s23, %s180_s30  }
   0xd   : > { %p254_p10 = pnand %p916_p6, %p253_p9 }
   0xe   : > { %p297_p11 = scmp.lt.s32.totalorder (!%p254_p10), %s1193_s24, 1  ;;  %s955_s14 = sshll.u32 (!%p254_p10), %s1193_s24, 10 }
   0xf   : > { %257 = sbr.rel (%p254_p10) target bundleno = 560 (0x230), region = 44  ;;  %s1444_s18 = scalar_lea.hbm (!%p254_p10), %s1503_s6, %s955_s14 }
  0x10   : > { %s1203_s20 = smov (!%p254_p10), [#allocation2]  }
  0x11   : > { %s1129_s27 = sshll.u32 (!%p254_p10), %s1203_s20, 4  ;;  %s1130_s27 = int_to_ptr.vmem [resolvable:$false] %s1129_s27 }
  0x14   : > { %s1298_s11 = scalar_select %p297_p11, %s1193_s24, 1  ;;  %vm325_vm0 = vcmask 261120   ;;  %v605_v16 = vld [vmem:[%s1500_s3 + $0x18] sm:$0xff]  ;;  %v604_v17 = vld [vmem:[%s1500_s3 + $0x10] sm:$0xff]  ;;  %v603_v19 = vld [vmem:[%s1500_s3 + $0x8] sm:$0xff] }
  0x15   : > { %1000 = vmatprep.subr.mxu1 %v605_v16  ;;  %v602_v20 = vld [vmem:[%s1500_s3] sm:$0xff] }
  0x16   : > { %s953_s12 = sshll.u32 %s1298_s11, 6  ;;  %1001 = vmatpush3.msra.mxu1 %v605_v16  ;;  %s293_s11 = sand.u32 1, %s1185_s22  }
  0x17   : > { %s304_s15 = scalar_lea.vmem %s1497_s0, %s953_s12  ;;  %s1331_s28 = scalar_lea.vmem %s1498_s1, %s953_s12  ;;  %1002 = vmatprep.subr.mxu1 %v604_v17 }
  0x18   : > { %v317_v0 = vld [vmem:[%s304_s15] sm:$0xff]  ;;  %v319_v1 = vld [vmem:[%s304_s15 + $0x10] sm:$0xff]  ;;  %v318_v2 = vld [vmem:[%s304_s15 + $0x8] sm:$0xff]  ;;  %1003 = vmatpush3.msra.mxu1 %v604_v17  ;;  %s917_s13 = sshll.u32 %s293_s11, 6  ;;  %s1452_s24 = scalar_lea.sflag [#allocation3], %s293_s11 }
  0x19   : > { %v326_v3 = vsel %vm325_vm0, %v317_v0, 0.0  ;;  %v332_v4 = vsel %vm325_vm0, %v319_v1, 0.0  ;;  %v320_v5 = vld [vmem:[%s304_s15 + $0x18] sm:$0xff]  ;;  %v329_v6 = vsel %vm325_vm0, %v318_v2, 0.0  ;;  %v321_v8 = vld [vmem:[%s304_s15 + $0x20] sm:$0xff]  ;;  %v322_v9 = vld [vmem:[%s304_s15 + $0x28] sm:$0xff]  ;;  %1004 = vmatprep.subr.mxu1 %v603_v19 }
  0x1a   : > { %327 = vadd.xlane.f32.xlu0 %v326_v3  ;;  %333 = vadd.xlane.f32.xlu1 %v332_v4  ;;  %v335_v7 = vsel %vm325_vm0, %v320_v5, 0.0  ;;  %v338_v10 = vsel %vm325_vm0, %v321_v8, 0.0  ;;  %v341_v11 = vsel %vm325_vm0, %v322_v9, 0.0  ;;  %v1312_v12 = vld [vmem:[%s304_s15 + $0x30] sm:$0xff]  ;;  %v1314_v13 = vld [vmem:[%s304_s15 + $0x38] sm:$0xff]  ;;  %v594_v18 = vld [vmem:[%s1331_s28] sm:$0xff] }
  0x1b   : > { %v344_v14 = vsel %vm325_vm0, %v1312_v12, 0.0  ;;  %v347_v15 = vsel %vm325_vm0, %v1314_v13, 0.0  ;;  %1008 = vmatprep.mubr.msk.f32.mxu1 %vm325_vm0, %v594_v18  ;;  %1005 = vmatpush3.msra.mxu1 %v603_v19  ;;  %v595_v21 = vld [vmem:[%s1331_s28 + $0x8] sm:$0xff]  ;;  %v596_v22 = vld [vmem:[%s1331_s28 + $0x10] sm:$0xff]  ;;  %v597_v23 = vld [vmem:[%s1331_s28 + $0x18] sm:$0xff]  ;;  %s295_s12 = scalar_lea.vmem [#allocation2], %s917_s13 }
  0x1c   : > { %1006 = vmatprep.subr.mxu1 %v602_v20  ;;  %v598_v62 = vld [vmem:[%s1331_s28 + $0x20] sm:$0xff]  ;;  %v601_v3 = vld [vmem:[%s1331_s28 + $0x38] sm:$0xff]  ;;  %s815_s15 = sshll.u32 %s295_s12, 4  ;;  %s1446_s15 = int_to_ptr.vmem [resolvable:$true] %s815_s15 }
  0x1d   : > { %1007 = vmatpush3.msra.mxu1 %v602_v20  ;;  %v464_v4 = vld [vmem:[%s1499_s2 + $0x18] sm:$0xff]  ;;  %s1125_s19 = scalar_lea.vmem %s1446_s15, 1024  ;;  %p1132_p1 = scmp.lt.s32.totalorder %s1446_s15, %s1130_s27 }
  0x1e   : > { %330 = vadd.xlane.f32.xlu0 %v329_v6  ;;  %336 = vadd.xlane.f32.xlu1 %v335_v7  ;;  %v462_v6 = vld [vmem:[%s1499_s2 + $0x8] sm:$0xff]  ;;  %v461_v7 = vld [vmem:[%s1499_s2] sm:$0xff]  ;;  %p1126_p12 = scmp.ne.s32.totalorder %s1446_s15, %s1125_s19 }
  0x1f   : > { %1009 = vmatmul.mubr.msk.f32.vlgmr.msra.gmra.mxu1 %vm325_vm0, %v595_v21  ;;  %980 = vmatprep.subr.mxu0 %v464_v4 }
  0x20   : > { %1011 = vmatprep.mubr.msk.f32.mxu1 %vm325_vm0, %v596_v22  ;;  %981 = vmatpush3.msra.mxu0 %v464_v4  ;;  %p1127_p13 = pnand %p1126_p12, %p1281_p4 }
  0x22   : > { %339 = vadd.xlane.f32.xlu0 %v338_v10  ;;  %342 = vadd.xlane.f32.xlu1 %v341_v11  ;;  %p1128_p0 = pneg %p1127_p13 }
  0x23   : > { %1012 = vmatmul.mubr.msk.f32.gmra.mxu1 %vm325_vm0, %v597_v23 }
  0x24   : > { %1014 = vmatprep.mubr.msk.f32.mxu1 %vm325_vm0, %v598_v62 }
  0x26   : > { %345 = vadd.xlane.f32.xlu0 %v344_v14  ;;  %348 = vadd.xlane.f32.xlu1 %v347_v15 }
  0xa3   : > { %v328_v24 = vpop.xlane.xlu0 %327  ;;  %v334_v25 = vpop.xlane.xlu1 %333 }
  0xa4   : > { %v351_v26 = vmul.f32 0.03125, %v328_v24  ;;  %v353_v27 = vmul.f32 0.03125, %v334_v25 }
  0xa6   : > { %v1347_v28 = vsub.f32 %v317_v0, %v351_v26  ;;  %v1349_v29 = vsub.f32 %v319_v1, %v353_v27  ;;  %v599_v0 = vld [vmem:[%s1331_s28 + $0x28] sm:$0xff] }
  0xa7   : > { %v331_v30 = vpop.xlane.xlu0 %330  ;;  %v337_v31 = vpop.xlane.xlu1 %336  ;;  %1015 = vmatmul.mubr.msk.f32.gmra.mxu1 %vm325_vm0, %v599_v0 }
  0xa8   : > { %v352_v32 = vmul.f32 0.03125, %v331_v30  ;;  %v354_v33 = vmul.f32 0.03125, %v337_v31  ;;  %v367_v34 = vmul.f32 %v1347_v28, %v1347_v28  ;;  %v369_v35 = vmul.f32 %v1349_v29, %v1349_v29 }
  0xaa   : > { %v1355_v36 = vsub.f32 %v318_v2, %v352_v32  ;;  %v1357_v37 = vsub.f32 %v320_v5, %v354_v33  ;;  %v375_v38 = vsel %vm325_vm0, %v367_v34, 0.0  ;;  %v381_v41 = vsel %vm325_vm0, %v369_v35, 0.0  ;;  %v600_v2 = vld [vmem:[%s1331_s28 + $0x30] sm:$0xff]  ;;  %v922_v34 = vld [vmem:[%s1501_s4] ss:$0 sm:$0xff]  ;;  %s1131_s28 = scalar_lea.vmem %s1130_s27, 2048 }
  0xab   : > { %376 = vadd.xlane.f32.xlu0 %v375_v38  ;;  %v340_v39 = vpop.xlane.xlu0 %339  ;;  %v343_v40 = vpop.xlane.xlu1 %342  ;;  %1017 = vmatprep.mubr.msk.f32.mxu1 %vm325_vm0, %v600_v2  ;;  %v463_v5 = vld [vmem:[%s1499_s2 + $0x10] sm:$0xff]  ;;  %p1133_p2 = scmp.lt.s32.totalorder %s1131_s28, %s1125_s19 }
  0xac   : > { %v355_v42 = vmul.f32 0.03125, %v340_v39  ;;  %v356_v43 = vmul.f32 0.03125, %v343_v40  ;;  %v368_v44 = vmul.f32 %v1355_v36, %v1355_v36  ;;  %v370_v45 = vmul.f32 %v1357_v37, %v1357_v37  ;;  %1018 = vmatmul.mubr.msk.f32.gmra.mxu1 %vm325_vm0, %v601_v3  ;;  %982 = vmatprep.subr.mxu0 %v463_v5  ;;  %v923_v39 = vld [vmem:[%s1502_s5] ss:$0 sm:$0xff] }
  0xad   : > { %983 = vmatpush3.msra.mxu0 %v463_v5  ;;  %p1134_p3 = por %p1133_p2, %p1132_p1 }
  0xae   : > { %v1365_v46 = vsub.f32 %v321_v8, %v355_v42  ;;  %v1367_v47 = vsub.f32 %v322_v9, %v356_v43  ;;  %v378_v48 = vsel %vm325_vm0, %v368_v44, 0.0  ;;  %v384_v51 = vsel %vm325_vm0, %v370_v45, 0.0  ;;  %984 = vmatprep.subr.mxu0 %v462_v6 }
  0xaf   : > { %382 = vadd.xlane.f32.xlu0 %v381_v41  ;;  %379 = vadd.xlane.f32.xlu1 %v378_v48  ;;  %v346_v49 = vpop.xlane.xlu0 %345  ;;  %v349_v50 = vpop.xlane.xlu1 %348  ;;  %p1135_p5 = pnand %p1134_p3, %p1128_p0 }
  0xb0   : > { %v357_v52 = vmul.f32 0.03125, %v346_v49  ;;  %v358_v53 = vmul.f32 0.03125, %v349_v50  ;;  %v371_v54 = vmul.f32 %v1365_v46, %v1365_v46  ;;  %v372_v55 = vmul.f32 %v1367_v47, %v1367_v47  ;;  %985 = vmatpush3.msra.mxu0 %v462_v6 }
  0xb1   : > { %986 = vmatprep.subr.mxu0 %v461_v7 }
  0xb2   : > { %v1376_v56 = vsub.f32 %v1312_v12, %v357_v52  ;;  %v1379_v57 = vsub.f32 %v1314_v13, %v358_v53  ;;  %v387_v58 = vsel %vm325_vm0, %v371_v54, 0.0  ;;  %v390_v59 = vsel %vm325_vm0, %v372_v55, 0.0  ;;  %987 = vmatpush3.msra.mxu0 %v461_v7 }
  0xb3   : > { %385 = vadd.xlane.f32.xlu1 %v384_v51  ;;  %388 = vadd.xlane.f32.xlu0 %v387_v58 }
  0xb4   : > { %v373_v60 = vmul.f32 %v1376_v56, %v1376_v56  ;;  %v374_v61 = vmul.f32 %v1379_v57, %v1379_v57 }
  0xb6   : > { %v393_v63 = vsel %vm325_vm0, %v373_v60, 0.0  ;;  %v396_v1 = vsel %vm325_vm0, %v374_v61, 0.0 }
  0xb7   : > { %391 = vadd.xlane.f32.xlu1 %v390_v59  ;;  %394 = vadd.xlane.f32.xlu0 %v393_v63 }
  0xbb   : > { %397 = vadd.xlane.f32.xlu1 %v396_v1 }
 0x134   : > { %v377_v8 = vpop.xlane.xlu0 %376 }
 0x135   : > { %v399_v9 = vmul.f32 0.03125, %v377_v8 }
 0x137   : > { %v407_v10 = vadd.f32 1e-05, %v399_v9 }
 0x138   : > { %v380_v11 = vpop.xlane.xlu1 %379  ;;  %v383_v12 = vpop.xlane.xlu0 %382 }
 0x139   : > { %1077 = vrsqrt.f32 %v407_v10  ;;  %v400_v13 = vmul.f32 0.03125, %v380_v11  ;;  %v401_v14 = vmul.f32 0.03125, %v383_v12 }
 0x13b   : > { %v408_v15 = vadd.f32 1e-05, %v400_v13  ;;  %v409_v16 = vadd.f32 1e-05, %v401_v14 }
 0x13c   : > { %v386_v17 = vpop.xlane.xlu1 %385  ;;  %v389_v18 = vpop.xlane.xlu0 %388 }
 0x13d   : > { %1079 = vrsqrt.f32 %v408_v15  ;;  %v402_v19 = vmul.f32 0.03125, %v386_v17  ;;  %v403_v20 = vmul.f32 0.03125, %v389_v18 }
 0x13e   : > { %1081 = vrsqrt.f32 %v409_v16 }
 0x13f   : > { %v410_v21 = vadd.f32 1e-05, %v402_v19  ;;  %v411_v22 = vadd.f32 1e-05, %v403_v20 }
 0x140   : > { %v392_v23 = vpop.xlane.xlu1 %391  ;;  %v395_v24 = vpop.xlane.xlu0 %394 }
 0x141   : > { %1083 = vrsqrt.f32 %v410_v21  ;;  %v404_v25 = vmul.f32 0.03125, %v392_v23  ;;  %v405_v26 = vmul.f32 0.03125, %v395_v24 }
 0x142   : > { %1085 = vrsqrt.f32 %v411_v22 }
 0x143   : > { %v412_v27 = vadd.f32 1e-05, %v404_v25  ;;  %v413_v30 = vadd.f32 1e-05, %v405_v26 }
 0x144   : > { %v398_v31 = vpop.xlane.xlu1 %397 }
 0x145   : > { %1087 = vrsqrt.f32 %v412_v27  ;;  %v406_v32 = vmul.f32 0.03125, %v398_v31 }
 0x146   : > { %v1078_v33 = vpop.eup %1077  ;;  %1089 = vrsqrt.f32 %v413_v30 }
 0x147   : > { %v414_v35 = vadd.f32 1e-05, %v406_v32  ;;  %v423_v38 = vmul.f32 %v1078_v33, %v1347_v28 }
 0x149   : > { %1091 = vrsqrt.f32 %v414_v35  ;;  %v438_v40 = vmul.f32 %v922_v34, %v423_v38 }
 0x14a   : > { %v1080_v41 = vpop.eup %1079 }
 0x14b   : > { %v1082_v42 = vpop.eup %1081  ;;  %v453_v43 = vadd.f32 %v923_v39, %v438_v40  ;;  %v424_v44 = vmul.f32 %v1080_v41, %v1355_v36 }
 0x14c   : > { %v425_v45 = vmul.f32 %v1082_v42, %v1349_v29 }
 0x14d   : > { %988 = vmatprep.mubr.msk.f32.mxu0 %vm325_vm0, %v453_v43  ;;  %v439_v48 = vmul.f32 %v922_v34, %v424_v44 }
 0x14e   : > { %v1084_v49 = vpop.eup %1083  ;;  %v440_v50 = vmul.f32 %v922_v34, %v425_v45 }
 0x14f   : > { %v1086_v51 = vpop.eup %1085  ;;  %v454_v28 = vadd.f32 %v923_v39, %v439_v48  ;;  %v426_v52 = vmul.f32 %v1084_v49, %v1357_v37 }
 0x150   : > { %v455_v53 = vadd.f32 %v923_v39, %v440_v50  ;;  %v427_v54 = vmul.f32 %v1086_v51, %v1365_v46 }
 0x151   : > { %989 = vmatmul.mubr.msk.f32.vlgmr.msra.gmra.mxu0 %vm325_vm0, %v454_v28  ;;  %v441_v55 = vmul.f32 %v922_v34, %v426_v52 }
 0x152   : > { %v1088_v58 = vpop.eup %1087  ;;  %991 = vmatprep.mubr.msk.f32.mxu0 %vm325_vm0, %v455_v53  ;;  %v442_v36 = vmul.f32 %v922_v34, %v427_v54 }
 0x153   : > { %v1090_v29 = vpop.eup %1089  ;;  %v456_v59 = vadd.f32 %v923_v39, %v441_v55  ;;  %v428_v60 = vmul.f32 %v1088_v58, %v1367_v47 }
 0x154   : > { %v457_v61 = vadd.f32 %v923_v39, %v442_v36  ;;  %v429_v62 = vmul.f32 %v1090_v29, %v1376_v56  ;;  %v1010_v56 = vpop.f32.mrf.mxu1 }
 0x155   : > { %992 = vmatmul.mubr.msk.f32.gmra.mxu0 %vm325_vm0, %v456_v59  ;;  %v443_v37 = vmul.f32 %v922_v34, %v428_v60  ;;  %v941_v7 = vmul.f32 -1.442695, %v1010_v56 }
 0x156   : > { %v1092_v63 = vpop.eup %1091  ;;  %994 = vmatprep.mubr.msk.f32.mxu0 %vm325_vm0, %v457_v61  ;;  %v444_v46 = vmul.f32 %v922_v34, %v429_v62  ;;  %v696_v4 = vpop.f32.mrf.mxu1 }
 0x157   : > { %v458_v0 = vadd.f32 %v923_v39, %v443_v37  ;;  %v430_v1 = vmul.f32 %v1092_v63, %v1379_v57  ;;  %v940_v9 = vmul.f32 -1.442695, %v696_v4  ;;  %1093 = vpow2.f32 %v941_v7 }
 0x158   : > { %v459_v2 = vadd.f32 %v923_v39, %v444_v46  ;;  %v1013_v5 = vpop.f32.mrf.mxu1 }
 0x159   : > { %995 = vmatmul.mubr.msk.f32.gmra.mxu0 %vm325_vm0, %v458_v0  ;;  %v445_v3 = vmul.f32 %v922_v34, %v430_v1  ;;  %v943_v10 = vmul.f32 -1.442695, %v1013_v5  ;;  %1095 = vpow2.f32 %v940_v9 }
 0x15a   : > { %997 = vmatprep.mubr.msk.f32.mxu0 %vm325_vm0, %v459_v2  ;;  %v706_v6 = vpop.f32.mrf.mxu1 }
 0x15b   : > { %v460_v47 = vadd.f32 %v923_v39, %v445_v3  ;;  %v942_v57 = vmul.f32 -1.442695, %v706_v6  ;;  %1097 = vpow2.f32 %v943_v10 }
 0x15d   : > { %998 = vmatmul.mubr.msk.f32.gmra.mxu0 %vm325_vm0, %v460_v47  ;;  %1099 = vpow2.f32 %v942_v57 }
 0x164   : > { %v1094_v18 = vpop.eup %1093 }
 0x165   : > { %v760_v20 = vadd.f32 1.0, %v1094_v18 }
 0x166   : > { %v1096_v19 = vpop.eup %1095 }
 0x167   : > { %v1016_v8 = vpop.f32.mrf.mxu1  ;;  %v759_v22 = vadd.f32 1.0, %v1096_v19 }
 0x168   : > { %v945_v12 = vmul.f32 -1.442695, %v1016_v8  ;;  %v1098_v21 = vpop.eup %1097 }
 0x169   : > { %v716_v11 = vpop.f32.mrf.mxu1  ;;  %v762_v24 = vadd.f32 1.0, %v1098_v21 }
 0x16a   : > { %v944_v14 = vmul.f32 -1.442695, %v716_v11  ;;  %1101 = vpow2.f32 %v945_v12  ;;  %v1100_v23 = vpop.eup %1099 }
 0x16b   : > { %v761_v26 = vadd.f32 1.0, %v1100_v23 }
 0x16c   : > { %v1019_v13 = vpop.f32.mrf.mxu1  ;;  %1103 = vpow2.f32 %v944_v14 }
 0x16d   : > { %v947_v15 = vmul.f32 -1.442695, %v1019_v13 }
 0x16e   : > { %v726_v16 = vpop.f32.mrf.mxu1 }
 0x16f   : > { %1105 = vpow2.f32 %v947_v15  ;;  %v946_v17 = vmul.f32 -1.442695, %v726_v16 }
 0x171   : > { %1107 = vpow2.f32 %v946_v17 }
 0x172   : > { %1109 = vrcp.f32 %v760_v20 }
 0x173   : > { %1111 = vrcp.f32 %v759_v22 }
 0x174   : > { %1113 = vrcp.f32 %v762_v24 }
 0x175   : > { %1115 = vrcp.f32 %v761_v26 }
 0x177   : > { %v1102_v25 = vpop.eup %1101 }
 0x178   : > { %v764_v30 = vadd.f32 1.0, %v1102_v25 }
 0x179   : > { %v1104_v27 = vpop.eup %1103 }
 0x17a   : > { %v763_v32 = vadd.f32 1.0, %v1104_v27  ;;  %1117 = vrcp.f32 %v764_v30 }
 0x17c   : > { %v1106_v31 = vpop.eup %1105  ;;  %1119 = vrcp.f32 %v763_v32 }
 0x17d   : > { %v766_v33 = vadd.f32 1.0, %v1106_v31 }
 0x17e   : > { %v1108_v34 = vpop.eup %1107 }
 0x17f   : > { %1121 = vrcp.f32 %v766_v33  ;;  %v765_v35 = vadd.f32 1.0, %v1108_v34  ;;  %v1110_v38 = vpop.eup %1109 }
 0x180   : > { %v1112_v40 = vpop.eup %1111 }
 0x181   : > { %1123 = vrcp.f32 %v765_v35  ;;  %v1114_v42 = vpop.eup %1113 }
 0x182   : > { %v1116_v48 = vpop.eup %1115 }
 0x187   : > { %v1118_v50 = vpop.eup %1117 }
 0x189   : > { %v1120_v53 = vpop.eup %1119 }
 0x18c   : > { %v1122_v55 = vpop.eup %1121 }
 0x18e   : > { %v1124_v60 = vpop.eup %1123 }
 0x211   : > { %v990_v39 = vpop.f32.mrf.mxu0 }
 0x212   : > { %v784_v41 = vmul.f32 %v1110_v38, %v990_v39 }
 0x213   : > { %v555_v43 = vpop.f32.mrf.mxu0 }
 0x214   : > { %792 = vst.msk [vmem:[%s295_s12 + $0x8] sm:$0xff] %vm325_vm0, %v784_v41  ;;  %v783_v44 = vmul.f32 %v1112_v40, %v555_v43 }
 0x215   : > { %v993_v45 = vpop.f32.mrf.mxu0 }
 0x216   : > { %791 = vst.msk [vmem:[%s295_s12] sm:$0xff] %vm325_vm0, %v783_v44  ;;  %v786_v49 = vmul.f32 %v1114_v42, %v993_v45 }
 0x217   : > { %v565_v51 = vpop.f32.mrf.mxu0 }
 0x218   : > { %794 = vst.msk [vmem:[%s295_s12 + $0x18] sm:$0xff] %vm325_vm0, %v786_v49  ;;  %v785_v28 = vmul.f32 %v1116_v48, %v565_v51 }
 0x219   : > { %v996_v52 = vpop.f32.mrf.mxu0 }
 0x21a   : > { %793 = vst.msk [vmem:[%s295_s12 + $0x10] sm:$0xff] %vm325_vm0, %v785_v28  ;;  %v788_v54 = vmul.f32 %v1118_v50, %v996_v52 }
 0x21b   : > { %v575_v58 = vpop.f32.mrf.mxu0 }
 0x21c   : > { %796 = vst.msk [vmem:[%s295_s12 + $0x28] sm:$0xff] %vm325_vm0, %v788_v54  ;;  %v787_v36 = vmul.f32 %v1120_v53, %v575_v58 }
 0x21d   : > { %v999_v29 = vpop.f32.mrf.mxu0 }
 0x21e   : > { %795 = vst.msk [vmem:[%s295_s12 + $0x20] sm:$0xff] %vm325_vm0, %v787_v36  ;;  %v790_v59 = vmul.f32 %v1122_v55, %v999_v29 }
 0x21f   : > { %v585_v61 = vpop.f32.mrf.mxu0 }
 0x220   : > { %798 = vst.msk [vmem:[%s295_s12 + $0x38] sm:$0xff] %vm325_vm0, %v790_v59  ;;  %v789_v62 = vmul.f32 %v1124_v60, %v585_v61 }
 0x222   : > { %797 = vst.msk [vmem:[%s295_s12 + $0x30] sm:$0xff] %vm325_vm0, %v789_v62 }
 0x223   : > { %1138 = shalt.err (!%p1135_p5)
}
 0x224   : > { %s1139_s30 = scalar_lea.hbm %s1444_s18, 1024  ;;  %s1143_s13 = scalar_lea.hbm %s1503_s6, 2048 }
 0x225   : > { %p1140_p6 = scmp.ne.s32.totalorder %s1444_s18, %s1139_s30  ;;  %p1144_p10 = scmp.lt.s32.totalorder %s1444_s18, %s1503_s6 }
 0x226   : > { %p1145_p11 = scmp.lt.s32.totalorder %s1143_s13, %s1139_s30 }
 0x227   : > { %p1141_p7 = pnand %p1140_p6, %p1281_p4 }
 0x228   : > { %p1146_p12 = por %p1145_p11, %p1144_p10 }
 0x229   : > { %p1142_p9 = pneg %p1141_p7 }
 0x22b   : > { %p1147_p13 = pnand %p1146_p12, %p1142_p9 }
 0x22d   : > { %1150 = shalt.err (!%p1147_p13)
}
 0x22e   : > { %s1204_s16 = smov 128   ;;  %s1205_s17 = smov 8  }
 0x22f   : > { %1020 = dma.vmem_to_hbm [thread:$0]  (%p1281_p4), %s1446_s15, 1024, %s1444_s18, %s1452_s24, %s1204_s16, %s1204_s16, %s1205_s17  }
 0x230 PF: > { %p1026_p0 = scmp.ge.s32.totalorder %s1201_s26, 2  ;;  %s830_s19 = sand.u32 1, %s1181_s21  }
 0x231   : > { %s831_s20 = scalar_lea.sflag [#allocation3], %s830_s19 }
 0x232   : > { %p1023_p1 = pnand %p1026_p0, %p1288_p8 }
 0x234   : > { %p1024_p2 = pneg %p1023_p1 }
 0x236   : > { %1176 = dma.done.wait (%p1024_p2), %s831_s20, 1024  }
 0x237   : > { %1178 = vsyncadd (%p1024_p2), %s831_s20, 4294966272  ;;  %s19_s26 = sadd.s32 1, %s1201_s26   ;;  %s1506_s21 = smov %s1185_s22 }
 0x238   : > { %p16_p3 = scmp.ge.s32.totalorder %s19_s26, 4   ;;  %s1507_s22 = smov %s1189_s23 }
 0x239   : > { %s1508_s23 = smov %s1294_s10  ;;  %s1509_s24 = smov %s1197_s25 }
 0x23a   : > { %s1510_s25 = smov %s1512_s29  ;;  %18 = sbr.rel (!%p16_p3) target bundleno = 4 (0x4), region = 82 }
 0x23f   :  { %836 = vsyncpa [#allocation3], 1 }
 0x240   :  { %838 = vsyncpa [#allocation3 + $0x1], 1 }

// kernel: triangle_multiplication.4
= control target key start
LH: loop header
LB: loop body
LE: loop exit
PB: predicated region body
PF: predicated region fallthrough
CT: control target
= control target key end

     0   :  { %s3138_s9 = smov 0   ;;  %s3140_s10 = smov 0   ;;  %s3441_s0 = inlined_call_operand.vmem [shape: f32[2,32,8,8], index: 0, kind: input, shape index: {}]   ;;  %s3442_s1 = inlined_call_operand.vmem [shape: f32[2,32,8,8], index: 1, kind: input, shape index: {}]   ;;  %s3443_s2 = inlined_call_operand.vmem [shape: f32[2,32,8,8], index: 2, kind: output, shape index: {}]  }
   0x1   :  { %s3142_s11 = smov 0  }
   0x2 LB: > { %s31_s12 = sadd.s32 1, %s3115_s10  ;;  %p2803_p0 = scmp.ge.s32.totalorder %s3119_s11, 1  ;;  %s3119_s11 = sphi %s3142_s11, %s12_s11   ;;  %s3115_s10 = sphi %s3140_s10, %s3445_s10   ;;  %s3111_s9 = sphi %s3138_s9, %s3444_s9  }
   0x3   : > { %p33_p1 = scmp.ge.s32.totalorder %s31_s12, 2  ;;  %p164_p2 = scmp.lt.s32.totalorder %s3119_s11, 3 }
   0x5   : > { %s3447_s12 = smov (%p33_p1, %s31_s12), 0  ;;  %p165_p3 = pnand %p2803_p0, %p164_p2 }
   0x6   : > { %p210_p4 = scmp.lt.s32.totalorder (!%p165_p3), %s3111_s9, 1 }
   0x7   : > { %168 = sbr.rel (%p165_p3) target bundleno = 272 (0x110), region = 28 }
   0xc   : > { %v3121_v0 = vmov 0.0   ;;  %s3449_s9 = smov (!%p210_p4, %s3111_s9), 1  ;;  %vm3122_vm0 = vmmov 0   ;;  %vm309_vm1 = vcmask 64512  }
   0xd   : > { %2911 = vmatprep.subr.mxu0 %v3121_v0  ;;  %2916 = vmatprep.subr.mxu1 %v3121_v0  ;;  %s3162_s13 = sshll.u32 %s3449_s9, 8 }
   0xe   : > { %2913 = vmatprep.mubr.msk.f32.mxu0 %vm3122_vm0, %v3121_v0  ;;  %2918 = vmatprep.mubr.msk.f32.mxu1 %vm3122_vm0, %v3121_v0  ;;  %s3168_s16 = scalar_lea.vmem %s3442_s1, %s3162_s13  ;;  %s3174_s19 = scalar_lea.vmem %s3441_s0, %s3162_s13 }
   0xf   : > { %v277_v1 = vld [vmem:[%s3168_s16] sm:$0xff]  ;;  %v278_v2 = vld [vmem:[%s3168_s16 + $0x8] sm:$0xff]  ;;  %v279_v5 = vld [vmem:[%s3168_s16 + $0x10] sm:$0xff]  ;;  %s3366_s22 = scalar_lea.vmem %s3443_s2, %s3162_s13 }
  0x10   : > { %v245_v3 = vld [vmem:[%s3174_s19] sm:$0xff]  ;;  %2912 = vmatpush3.msra.mxu0 %v277_v1  ;;  %2917 = vmatpush3.msra.mxu1 %v278_v2  ;;  %v246_v4 = vld [vmem:[%s3174_s19 + $0x8] sm:$0xff]  ;;  %v280_v6 = vld [vmem:[%s3168_s16 + $0x18] sm:$0xff] }
  0x11   : > { %2914 = vmatmul.mubr.msk.f32.vlgmr.msra.gmra.mxu0 %vm309_vm1, %v245_v3  ;;  %2919 = vmatmul.mubr.msk.f32.vlgmr.msra.gmra.mxu1 %vm309_vm1, %v246_v4  ;;  %v247_v7 = vld [vmem:[%s3174_s19 + $0x10] sm:$0xff]  ;;  %v248_v8 = vld [vmem:[%s3174_s19 + $0x18] sm:$0xff]  ;;  %v281_v9 = vld [vmem:[%s3168_s16 + $0x20] sm:$0xff] }
  0x12   : > { %2921 = vmatprep.subr.mxu0 %v3121_v0  ;;  %2926 = vmatprep.subr.mxu1 %v3121_v0  ;;  %v282_v10 = vld [vmem:[%s3168_s16 + $0x28] sm:$0xff]  ;;  %v249_v11 = vld [vmem:[%s3174_s19 + $0x20] sm:$0xff]  ;;  %v283_v13 = vld [vmem:[%s3168_s16 + $0x30] sm:$0xff] }
  0x13   : > { %2922 = vmatpush3.msra.mxu0 %v279_v5  ;;  %2927 = vmatpush3.msra.mxu1 %v280_v6  ;;  %v250_v12 = vld [vmem:[%s3174_s19 + $0x28] sm:$0xff]  ;;  %v284_v14 = vld [vmem:[%s3168_s16 + $0x38] sm:$0xff]  ;;  %v251_v15 = vld [vmem:[%s3174_s19 + $0x30] sm:$0xff] }
  0x14   : > { %2923 = vmatprep.mubr.msk.f32.mxu0 %vm3122_vm0, %v3121_v0  ;;  %2928 = vmatprep.mubr.msk.f32.mxu1 %vm3122_vm0, %v3121_v0  ;;  %v252_v16 = vld [vmem:[%s3174_s19 + $0x38] sm:$0xff]  ;;  %v285_v17 = vld [vmem:[%s3168_s16 + $0x40] sm:$0xff]  ;;  %v286_v18 = vld [vmem:[%s3168_s16 + $0x48] sm:$0xff] }
  0x15   : > { %2924 = vmatmul.mubr.msk.f32.vlgmr.msra.gmra.mxu0 %vm309_vm1, %v247_v7  ;;  %2929 = vmatmul.mubr.msk.f32.vlgmr.msra.gmra.mxu1 %vm309_vm1, %v248_v8  ;;  %v253_v19 = vld [vmem:[%s3174_s19 + $0x40] sm:$0xff]  ;;  %v254_v20 = vld [vmem:[%s3174_s19 + $0x48] sm:$0xff]  ;;  %v287_v21 = vld [vmem:[%s3168_s16 + $0x50] sm:$0xff] }
  0x16   : > { %2931 = vmatprep.subr.mxu0 %v3121_v0  ;;  %2936 = vmatprep.subr.mxu1 %v3121_v0  ;;  %v288_v22 = vld [vmem:[%s3168_s16 + $0x58] sm:$0xff]  ;;  %v255_v23 = vld [vmem:[%s3174_s19 + $0x50] sm:$0xff]  ;;  %v289_v25 = vld [vmem:[%s3168_s16 + $0x60] sm:$0xff] }
  0x17   : > { %2932 = vmatpush3.msra.mxu0 %v281_v9  ;;  %2937 = vmatpush3.msra.mxu1 %v282_v10  ;;  %v256_v24 = vld [vmem:[%s3174_s19 + $0x58] sm:$0xff]  ;;  %v290_v26 = vld [vmem:[%s3168_s16 + $0x68] sm:$0xff]  ;;  %v257_v27 = vld [vmem:[%s3174_s19 + $0x60] sm:$0xff] }
  0x18   : > { %2933 = vmatprep.mubr.msk.f32.mxu0 %vm3122_vm0, %v3121_v0  ;;  %2938 = vmatprep.mubr.msk.f32.mxu1 %vm3122_vm0, %v3121_v0  ;;  %v258_v28 = vld [vmem:[%s3174_s19 + $0x68] sm:$0xff]  ;;  %v291_v29 = vld [vmem:[%s3168_s16 + $0x70] sm:$0xff]  ;;  %v292_v30 = vld [vmem:[%s3168_s16 + $0x78] sm:$0xff] }
  0x19   : > { %2934 = vmatmul.mubr.msk.f32.vlgmr.msra.gmra.mxu0 %vm309_vm1, %v249_v11  ;;  %2939 = vmatmul.mubr.msk.f32.vlgmr.msra.gmra.mxu1 %vm309_vm1, %v250_v12  ;;  %v259_v31 = vld [vmem:[%s3174_s19 + $0x70] sm:$0xff]  ;;  %v260_v32 = vld [vmem:[%s3174_s19 + $0x78] sm:$0xff]  ;;  %v293_v33 = vld [vmem:[%s3168_s16 + $0x80] sm:$0xff] }
  0x1a   : > { %2941 = vmatprep.subr.mxu0 %v3121_v0  ;;  %2946 = vmatprep.subr.mxu1 %v3121_v0  ;;  %v294_v34 = vld [vmem:[%s3168_s16 + $0x88] sm:$0xff]  ;;  %v261_v35 = vld [vmem:[%s3174_s19 + $0x80] sm:$0xff]  ;;  %v295_v37 = vld [vmem:[%s3168_s16 + $0x90] sm:$0xff] }
  0x1b   : > { %2942 = vmatpush3.msra.mxu0 %v283_v13  ;;  %2947 = vmatpush3.msra.mxu1 %v284_v14  ;;  %v262_v36 = vld [vmem:[%s3174_s19 + $0x88] sm:$0xff]  ;;  %v296_v38 = vld [vmem:[%s3168_s16 + $0x98] sm:$0xff]  ;;  %v263_v39 = vld [vmem:[%s3174_s19 + $0x90] sm:$0xff] }
  0x1c   : > { %2943 = vmatprep.mubr.msk.f32.mxu0 %vm3122_vm0, %v3121_v0  ;;  %2948 = vmatprep.mubr.msk.f32.mxu1 %vm3122_vm0, %v3121_v0  ;;  %v264_v40 = vld [vmem:[%s3174_s19 + $0x98] sm:$0xff]  ;;  %v297_v41 = vld [vmem:[%s3168_s16 + $0xa0] sm:$0xff]  ;;  %v298_v42 = vld [vmem:[%s3168_s16 + $0xa8] sm:$0xff] }
  0x1d   : > { %2944 = vmatmul.mubr.msk.f32.vlgmr.msra.gmra.mxu0 %vm309_vm1, %v251_v15  ;;  %2949 = vmatmul.mubr.msk.f32.vlgmr.msra.gmra.mxu1 %vm309_vm1, %v252_v16  ;;  %v265_v43 = vld [vmem:[%s3174_s19 + $0xa0] sm:$0xff]  ;;  %v266_v44 = vld [vmem:[%s3174_s19 + $0xa8] sm:$0xff]  ;;  %v299_v45 = vld [vmem:[%s3168_s16 + $0xb0] sm:$0xff] }
  0x1e   : > { %2951 = vmatprep.subr.mxu0 %v3121_v0  ;;  %2956 = vmatprep.subr.mxu1 %v3121_v0  ;;  %v300_v46 = vld [vmem:[%s3168_s16 + $0xb8] sm:$0xff]  ;;  %v267_v47 = vld [vmem:[%s3174_s19 + $0xb0] sm:$0xff]  ;;  %v301_v49 = vld [vmem:[%s3168_s16 + $0xc0] sm:$0xff] }
  0x1f   : > { %2952 = vmatpush3.msra.mxu0 %v285_v17  ;;  %2957 = vmatpush3.msra.mxu1 %v286_v18  ;;  %v268_v48 = vld [vmem:[%s3174_s19 + $0xb8] sm:$0xff]  ;;  %v302_v50 = vld [vmem:[%s3168_s16 + $0xc8] sm:$0xff]  ;;  %v269_v51 = vld [vmem:[%s3174_s19 + $0xc0] sm:$0xff] }
  0x20   : > { %2953 = vmatprep.mubr.msk.f32.mxu0 %vm3122_vm0, %v3121_v0  ;;  %2958 = vmatprep.mubr.msk.f32.mxu1 %vm3122_vm0, %v3121_v0  ;;  %v270_v52 = vld [vmem:[%s3174_s19 + $0xc8] sm:$0xff]  ;;  %v303_v53 = vld [vmem:[%s3168_s16 + $0xd0] sm:$0xff]  ;;  %v304_v54 = vld [vmem:[%s3168_s16 + $0xd8] sm:$0xff] }
  0x21   : > { %2954 = vmatmul.mubr.msk.f32.vlgmr.msra.gmra.mxu0 %vm309_vm1, %v253_v19  ;;  %2959 = vmatmul.mubr.msk.f32.vlgmr.msra.gmra.mxu1 %vm309_vm1, %v254_v20  ;;  %v271_v55 = vld [vmem:[%s3174_s19 + $0xd0] sm:$0xff]  ;;  %v272_v56 = vld [vmem:[%s3174_s19 + $0xd8] sm:$0xff]  ;;  %v305_v57 = vld [vmem:[%s3168_s16 + $0xe0] sm:$0xff] }
  0x22   : > { %2961 = vmatprep.subr.mxu0 %v3121_v0  ;;  %2966 = vmatprep.subr.mxu1 %v3121_v0  ;;  %v306_v58 = vld [vmem:[%s3168_s16 + $0xe8] sm:$0xff]  ;;  %v273_v59 = vld [vmem:[%s3174_s19 + $0xe0] sm:$0xff]  ;;  %v307_v61 = vld [vmem:[%s3168_s16 + $0xf0] sm:$0xff] }
  0x23   : > { %2962 = vmatpush3.msra.mxu0 %v287_v21  ;;  %2967 = vmatpush3.msra.mxu1 %v288_v22  ;;  %v274_v60 = vld [vmem:[%s3174_s19 + $0xe8] sm:$0xff]  ;;  %v308_v62 = vld [vmem:[%s3168_s16 + $0xf8] sm:$0xff]  ;;  %v275_v63 = vld [vmem:[%s3174_s19 + $0xf0] sm:$0xff] }
  0x24   : > { %2963 = vmatprep.mubr.msk.f32.mxu0 %vm3122_vm0, %v3121_v0  ;;  %2968 = vmatprep.mubr.msk.f32.mxu1 %vm3122_vm0, %v3121_v0  ;;  %v276_v1 = vld [vmem:[%s3174_s19 + $0xf8] sm:$0xff] }
  0x25   : > { %2964 = vmatmul.mubr.msk.f32.vlgmr.msra.gmra.mxu0 %vm309_vm1, %v255_v23  ;;  %2969 = vmatmul.mubr.msk.f32.vlgmr.msra.gmra.mxu1 %vm309_vm1, %v256_v24 }
  0x26   : > { %2971 = vmatprep.subr.mxu0 %v3121_v0  ;;  %2976 = vmatprep.subr.mxu1 %v3121_v0 }
  0x27   : > { %2972 = vmatpush3.msra.mxu0 %v289_v25  ;;  %2977 = vmatpush3.msra.mxu1 %v290_v26 }
  0x28   : > { %2973 = vmatprep.mubr.msk.f32.mxu0 %vm3122_vm0, %v3121_v0  ;;  %2978 = vmatprep.mubr.msk.f32.mxu1 %vm3122_vm0, %v3121_v0 }
  0x29   : > { %2974 = vmatmul.mubr.msk.f32.vlgmr.msra.gmra.mxu0 %vm309_vm1, %v257_v27  ;;  %2979 = vmatmul.mubr.msk.f32.vlgmr.msra.gmra.mxu1 %vm309_vm1, %v258_v28 }
  0x2a   : > { %2981 = vmatprep.subr.mxu0 %v3121_v0  ;;  %2986 = vmatprep.subr.mxu1 %v3121_v0 }
  0x2b   : > { %2982 = vmatpush3.msra.mxu0 %v291_v29  ;;  %2987 = vmatpush3.msra.mxu1 %v292_v30 }
  0x2c   : > { %2983 = vmatprep.mubr.msk.f32.mxu0 %vm3122_vm0, %v3121_v0  ;;  %2988 = vmatprep.mubr.msk.f32.mxu1 %vm3122_vm0, %v3121_v0 }
  0x2d   : > { %2984 = vmatmul.mubr.msk.f32.vlgmr.msra.gmra.mxu0 %vm309_vm1, %v259_v31  ;;  %2989 = vmatmul.mubr.msk.f32.vlgmr.msra.gmra.mxu1 %vm309_vm1, %v260_v32 }
  0x2e   : > { %2991 = vmatprep.subr.mxu0 %v3121_v0  ;;  %2996 = vmatprep.subr.mxu1 %v3121_v0 }
  0x2f   : > { %2992 = vmatpush3.msra.mxu0 %v293_v33  ;;  %2997 = vmatpush3.msra.mxu1 %v294_v34 }
  0x30   : > { %2993 = vmatprep.mubr.msk.f32.mxu0 %vm3122_vm0, %v3121_v0  ;;  %2998 = vmatprep.mubr.msk.f32.mxu1 %vm3122_vm0, %v3121_v0 }
  0x31   : > { %2994 = vmatmul.mubr.msk.f32.vlgmr.msra.gmra.mxu0 %vm309_vm1, %v261_v35  ;;  %2999 = vmatmul.mubr.msk.f32.vlgmr.msra.gmra.mxu1 %vm309_vm1, %v262_v36 }
  0x32   : > { %3001 = vmatprep.subr.mxu0 %v3121_v0  ;;  %3006 = vmatprep.subr.mxu1 %v3121_v0 }
  0x33   : > { %3002 = vmatpush3.msra.mxu0 %v295_v37  ;;  %3007 = vmatpush3.msra.mxu1 %v296_v38 }
  0x34   : > { %3003 = vmatprep.mubr.msk.f32.mxu0 %vm3122_vm0, %v3121_v0  ;;  %3008 = vmatprep.mubr.msk.f32.mxu1 %vm3122_vm0, %v3121_v0 }
  0x35   : > { %3004 = vmatmul.mubr.msk.f32.vlgmr.msra.gmra.mxu0 %vm309_vm1, %v263_v39  ;;  %3009 = vmatmul.mubr.msk.f32.vlgmr.msra.gmra.mxu1 %vm309_vm1, %v264_v40 }
  0x36   : > { %3011 = vmatprep.subr.mxu0 %v3121_v0  ;;  %3016 = vmatprep.subr.mxu1 %v3121_v0 }
  0x37   : > { %3012 = vmatpush3.msra.mxu0 %v297_v41  ;;  %3017 = vmatpush3.msra.mxu1 %v298_v42 }
  0x38   : > { %3013 = vmatprep.mubr.msk.f32.mxu0 %vm3122_vm0, %v3121_v0  ;;  %3018 = vmatprep.mubr.msk.f32.mxu1 %vm3122_vm0, %v3121_v0 }
  0x39   : > { %3014 = vmatmul.mubr.msk.f32.vlgmr.msra.gmra.mxu0 %vm309_vm1, %v265_v43  ;;  %3019 = vmatmul.mubr.msk.f32.vlgmr.msra.gmra.mxu1 %vm309_vm1, %v266_v44 }
  0x3a   : > { %3021 = vmatprep.subr.mxu0 %v3121_v0  ;;  %3026 = vmatprep.subr.mxu1 %v3121_v0 }
  0x3b   : > { %3022 = vmatpush3.msra.mxu0 %v299_v45  ;;  %3027 = vmatpush3.msra.mxu1 %v300_v46 }
  0x3c   : > { %3023 = vmatprep.mubr.msk.f32.mxu0 %vm3122_vm0, %v3121_v0  ;;  %3028 = vmatprep.mubr.msk.f32.mxu1 %vm3122_vm0, %v3121_v0 }
  0x3d   : > { %3024 = vmatmul.mubr.msk.f32.vlgmr.msra.gmra.mxu0 %vm309_vm1, %v267_v47  ;;  %3029 = vmatmul.mubr.msk.f32.vlgmr.msra.gmra.mxu1 %vm309_vm1, %v268_v48 }
  0x3e   : > { %3031 = vmatprep.subr.mxu0 %v3121_v0  ;;  %3036 = vmatprep.subr.mxu1 %v3121_v0 }
  0x3f   : > { %3032 = vmatpush3.msra.mxu0 %v301_v49  ;;  %3037 = vmatpush3.msra.mxu1 %v302_v50 }
  0x40   : > { %3033 = vmatprep.mubr.msk.f32.mxu0 %vm3122_vm0, %v3121_v0  ;;  %3038 = vmatprep.mubr.msk.f32.mxu1 %vm3122_vm0, %v3121_v0 }
  0x41   : > { %3034 = vmatmul.mubr.msk.f32.vlgmr.msra.gmra.mxu0 %vm309_vm1, %v269_v51  ;;  %3039 = vmatmul.mubr.msk.f32.vlgmr.msra.gmra.mxu1 %vm309_vm1, %v270_v52 }
  0x42   : > { %3041 = vmatprep.subr.mxu0 %v3121_v0  ;;  %3046 = vmatprep.subr.mxu1 %v3121_v0 }
  0x43   : > { %3042 = vmatpush3.msra.mxu0 %v303_v53  ;;  %3047 = vmatpush3.msra.mxu1 %v304_v54 }
  0x44   : > { %3043 = vmatprep.mubr.msk.f32.mxu0 %vm3122_vm0, %v3121_v0  ;;  %3048 = vmatprep.mubr.msk.f32.mxu1 %vm3122_vm0, %v3121_v0 }
  0x45   : > { %3044 = vmatmul.mubr.msk.f32.vlgmr.msra.gmra.mxu0 %vm309_vm1, %v271_v55  ;;  %3049 = vmatmul.mubr.msk.f32.vlgmr.msra.gmra.mxu1 %vm309_vm1, %v272_v56 }
  0x46   : > { %3051 = vmatprep.subr.mxu0 %v3121_v0  ;;  %3056 = vmatprep.subr.mxu1 %v3121_v0 }
  0x47   : > { %3052 = vmatpush3.msra.mxu0 %v305_v57  ;;  %3057 = vmatpush3.msra.mxu1 %v306_v58 }
  0x48   : > { %3053 = vmatprep.mubr.msk.f32.mxu0 %vm3122_vm0, %v3121_v0  ;;  %3058 = vmatprep.mubr.msk.f32.mxu1 %vm3122_vm0, %v3121_v0 }
  0x49   : > { %3054 = vmatmul.mubr.msk.f32.vlgmr.msra.gmra.mxu0 %vm309_vm1, %v273_v59  ;;  %3059 = vmatmul.mubr.msk.f32.vlgmr.msra.gmra.mxu1 %vm309_vm1, %v274_v60 }
  0x4a   : > { %3061 = vmatprep.subr.mxu0 %v3121_v0  ;;  %3066 = vmatprep.subr.mxu1 %v3121_v0 }
  0x4b   : > { %3062 = vmatpush3.msra.mxu0 %v307_v61  ;;  %3067 = vmatpush3.msra.mxu1 %v308_v62 }
  0x4c   : > { %3063 = vmatprep.mubr.msk.f32.mxu0 %vm3122_vm0, %v3121_v0  ;;  %3068 = vmatprep.mubr.msk.f32.mxu1 %vm3122_vm0, %v3121_v0 }
  0x4d   : > { %3064 = vmatmul.mubr.msk.f32.vlgmr.msra.gmra.mxu0 %vm309_vm1, %v275_v63  ;;  %3069 = vmatmul.mubr.msk.f32.vlgmr.msra.gmra.mxu1 %vm309_vm1, %v276_v1 }
  0xd1   : > { %v379_v2 = vpop.f32.mrf.mxu0  ;;  %v452_v3 = vpop.f32.mrf.mxu1 }
  0xd2   : > { %2646 = vst.msk [vmem:[%s3366_s22] sm:$0xff] %vm309_vm1, %v379_v2  ;;  %2647 = vst.msk [vmem:[%s3366_s22 + $0x8] sm:$0xff] %vm309_vm1, %v452_v3 }
  0xd3   : > { %v2915_v0 = vpop.f32.mrf.mxu0  ;;  %v2920_v4 = vpop.f32.mrf.mxu1 }
  0xd5   : > { %v525_v5 = vpop.f32.mrf.mxu0  ;;  %v598_v6 = vpop.f32.mrf.mxu1 }
  0xd6   : > { %2648 = vst.msk [vmem:[%s3366_s22 + $0x10] sm:$0xff] %vm309_vm1, %v525_v5  ;;  %2649 = vst.msk [vmem:[%s3366_s22 + $0x18] sm:$0xff] %vm309_vm1, %v598_v6 }
  0xd7   : > { %v2925_v7 = vpop.f32.mrf.mxu0  ;;  %v2930_v8 = vpop.f32.mrf.mxu1 }
  0xd9   : > { %v671_v9 = vpop.f32.mrf.mxu0  ;;  %v744_v10 = vpop.f32.mrf.mxu1 }
  0xda   : > { %2650 = vst.msk [vmem:[%s3366_s22 + $0x20] sm:$0xff] %vm309_vm1, %v671_v9  ;;  %2651 = vst.msk [vmem:[%s3366_s22 + $0x28] sm:$0xff] %vm309_vm1, %v744_v10 }
  0xdb   : > { %v2935_v11 = vpop.f32.mrf.mxu0  ;;  %v2940_v12 = vpop.f32.mrf.mxu1 }
  0xdd   : > { %v817_v13 = vpop.f32.mrf.mxu0  ;;  %v890_v14 = vpop.f32.mrf.mxu1 }
  0xde   : > { %2652 = vst.msk [vmem:[%s3366_s22 + $0x30] sm:$0xff] %vm309_vm1, %v817_v13  ;;  %2653 = vst.msk [vmem:[%s3366_s22 + $0x38] sm:$0xff] %vm309_vm1, %v890_v14 }
  0xdf   : > { %v2945_v15 = vpop.f32.mrf.mxu0  ;;  %v2950_v16 = vpop.f32.mrf.mxu1 }
  0xe1   : > { %v963_v17 = vpop.f32.mrf.mxu0  ;;  %v1036_v18 = vpop.f32.mrf.mxu1 }
  0xe2   : > { %2654 = vst.msk [vmem:[%s3366_s22 + $0x40] sm:$0xff] %vm309_vm1, %v963_v17  ;;  %2655 = vst.msk [vmem:[%s3366_s22 + $0x48] sm:$0xff] %vm309_vm1, %v1036_v18 }
  0xe3   : > { %v2955_v19 = vpop.f32.mrf.mxu0  ;;  %v2960_v20 = vpop.f32.mrf.mxu1 }
  0xe5   : > { %v1109_v21 = vpop.f32.mrf.mxu0  ;;  %v1182_v22 = vpop.f32.mrf.mxu1 }
  0xe6   : > { %2656 = vst.msk [vmem:[%s3366_s22 + $0x50] sm:$0xff] %vm309_vm1, %v1109_v21  ;;  %2657 = vst.msk [vmem:[%s3366_s22 + $0x58] sm:$0xff] %vm309_vm1, %v1182_v22 }
  0xe7   : > { %v2965_v23 = vpop.f32.mrf.mxu0  ;;  %v2970_v24 = vpop.f32.mrf.mxu1 }
  0xe9   : > { %v1255_v25 = vpop.f32.mrf.mxu0  ;;  %v1328_v26 = vpop.f32.mrf.mxu1 }
  0xea   : > { %2658 = vst.msk [vmem:[%s3366_s22 + $0x60] sm:$0xff] %vm309_vm1, %v1255_v25  ;;  %2659 = vst.msk [vmem:[%s3366_s22 + $0x68] sm:$0xff] %vm309_vm1, %v1328_v26 }
  0xeb   : > { %v2975_v27 = vpop.f32.mrf.mxu0  ;;  %v2980_v28 = vpop.f32.mrf.mxu1 }
  0xed   : > { %v1401_v29 = vpop.f32.mrf.mxu0  ;;  %v1474_v30 = vpop.f32.mrf.mxu1 }
  0xee   : > { %2660 = vst.msk [vmem:[%s3366_s22 + $0x70] sm:$0xff] %vm309_vm1, %v1401_v29  ;;  %2661 = vst.msk [vmem:[%s3366_s22 + $0x78] sm:$0xff] %vm309_vm1, %v1474_v30 }
  0xef   : > { %v2985_v31 = vpop.f32.mrf.mxu0  ;;  %v2990_v32 = vpop.f32.mrf.mxu1 }
  0xf1   : > { %v1547_v33 = vpop.f32.mrf.mxu0  ;;  %v1620_v34 = vpop.f32.mrf.mxu1 }
  0xf2   : > { %2662 = vst.msk [vmem:[%s3366_s22 + $0x80] sm:$0xff] %vm309_vm1, %v1547_v33  ;;  %2663 = vst.msk [vmem:[%s3366_s22 + $0x88] sm:$0xff] %vm309_vm1, %v1620_v34 }
  0xf3   : > { %v2995_v35 = vpop.f32.mrf.mxu0  ;;  %v3000_v36 = vpop.f32.mrf.mxu1 }
  0xf5   : > { %v1693_v37 = vpop.f32.mrf.mxu0  ;;  %v1766_v38 = vpop.f32.mrf.mxu1 }
  0xf6   : > { %2664 = vst.msk [vmem:[%s3366_s22 + $0x90] sm:$0xff] %vm309_vm1, %v1693_v37  ;;  %2665 = vst.msk [vmem:[%s3366_s22 + $0x98] sm:$0xff] %vm309_vm1, %v1766_v38 }
  0xf7   : > { %v3005_v39 = vpop.f32.mrf.mxu0  ;;  %v3010_v40 = vpop.f32.mrf.mxu1 }
  0xf9   : > { %v1839_v41 = vpop.f32.mrf.mxu0  ;;  %v1912_v42 = vpop.f32.mrf.mxu1 }
  0xfa   : > { %2666 = vst.msk [vmem:[%s3366_s22 + $0xa0] sm:$0xff] %vm309_vm1, %v1839_v41  ;;  %2667 = vst.msk [vmem:[%s3366_s22 + $0xa8] sm:$0xff] %vm309_vm1, %v1912_v42 }
  0xfb   : > { %v3015_v43 = vpop.f32.mrf.mxu0  ;;  %v3020_v44 = vpop.f32.mrf.mxu1 }
  0xfd   : > { %v1985_v45 = vpop.f32.mrf.mxu0  ;;  %v2058_v46 = vpop.f32.mrf.mxu1 }
  0xfe   : > { %2668 = vst.msk [vmem:[%s3366_s22 + $0xb0] sm:$0xff] %vm309_vm1, %v1985_v45  ;;  %2669 = vst.msk [vmem:[%s3366_s22 + $0xb8] sm:$0xff] %vm309_vm1, %v2058_v46 }
  0xff   : > { %v3025_v47 = vpop.f32.mrf.mxu0  ;;  %v3030_v48 = vpop.f32.mrf.mxu1 }
 0x101   : > { %v2131_v49 = vpop.f32.mrf.mxu0  ;;  %v2204_v50 = vpop.f32.mrf.mxu1 }
 0x102   : > { %2670 = vst.msk [vmem:[%s3366_s22 + $0xc0] sm:$0xff] %vm309_vm1, %v2131_v49  ;;  %2671 = vst.msk [vmem:[%s3366_s22 + $0xc8] sm:$0xff] %vm309_vm1, %v2204_v50 }
 0x103   : > { %v3035_v51 = vpop.f32.mrf.mxu0  ;;  %v3040_v52 = vpop.f32.mrf.mxu1 }
 0x105   : > { %v2277_v53 = vpop.f32.mrf.mxu0  ;;  %v2350_v54 = vpop.f32.mrf.mxu1 }
 0x106   : > { %2672 = vst.msk [vmem:[%s3366_s22 + $0xd0] sm:$0xff] %vm309_vm1, %v2277_v53  ;;  %2673 = vst.msk [vmem:[%s3366_s22 + $0xd8] sm:$0xff] %vm309_vm1, %v2350_v54 }
 0x107   : > { %v3045_v55 = vpop.f32.mrf.mxu0  ;;  %v3050_v56 = vpop.f32.mrf.mxu1 }
 0x109   : > { %v2423_v57 = vpop.f32.mrf.mxu0  ;;  %v2496_v58 = vpop.f32.mrf.mxu1 }
 0x10a   : > { %2674 = vst.msk [vmem:[%s3366_s22 + $0xe0] sm:$0xff] %vm309_vm1, %v2423_v57  ;;  %2675 = vst.msk [vmem:[%s3366_s22 + $0xe8] sm:$0xff] %vm309_vm1, %v2496_v58 }
 0x10b   : > { %v3055_v59 = vpop.f32.mrf.mxu0  ;;  %v3060_v60 = vpop.f32.mrf.mxu1 }
 0x10d   : > { %v2569_v61 = vpop.f32.mrf.mxu0  ;;  %v2642_v62 = vpop.f32.mrf.mxu1 }
 0x10e   : > { %2676 = vst.msk [vmem:[%s3366_s22 + $0xf0] sm:$0xff] %vm309_vm1, %v2569_v61  ;;  %2677 = vst.msk [vmem:[%s3366_s22 + $0xf8] sm:$0xff] %vm309_vm1, %v2642_v62 }
 0x10f   : > { %v3065_v63 = vpop.f32.mrf.mxu0  ;;  %v3070_v1 = vpop.f32.mrf.mxu1 }
 0x110 PF: > { %s12_s11 = sadd.s32 1, %s3119_s11   ;;  %s3444_s9 = smov %s3115_s10 }
 0x111   : > { %p9_p5 = scmp.ge.s32.totalorder %s12_s11, 4   ;;  %s3445_s10 = smov %s3447_s12 }
 0x113   :  { %11 = sbr.rel (!%p9_p5) target bundleno = 2 (0x2), region = 61 }

</bundles_post_ra>
